<compile_context>
chip_gen: v7x
topology: tpu7x:2x2x1
jax: 0.10.0
libtpu: 0.0.40
codegen_flags: <defaults>
</compile_context>

<pallas_src>
import math

import jax
import jax.numpy as jnp
from jax.experimental import pallas as pl
from jax.experimental.pallas import tpu as pltpu

BN_EPS = 1e-5


# ----------------------------------------------------------------------------
# Fused Pallas kernel: BN -> stacked LSTM -> FC(last step)
# ----------------------------------------------------------------------------
def _make_rnn_kernel(T, B, H, num_layers):
    n_in = 3 + 3 * num_layers + 2  # x, bn_scale, bn_shift, per-layer (wih,whh,b), fc_w, fc_b

    def kernel(*refs):
        x_ref, scale_ref, shift_ref = refs[0], refs[1], refs[2]
        w_refs = refs[3:3 + 3 * num_layers]
        fcw_ref = refs[3 + 3 * num_layers]
        fcb_ref = refs[3 + 3 * num_layers + 1]
        out_ref = refs[n_in]        # (B, num_classes)
        seq_ref = refs[n_in + 1]    # (T*B, H) VMEM scratch: inter-layer sequence

        # Eval-mode BatchNorm folded to per-feature scale/shift.
        seq = x_ref[...] * scale_ref[...] + shift_ref[...]           # (T*B, D)

        h = None
        for layer in range(num_layers):
            wih_ref, whh_ref, b_ref = w_refs[3 * layer:3 * layer + 3]
            last_layer = layer == num_layers - 1

            # Hoisted input projection for the whole sequence: one MXU matmul
            # instead of T tiny ones on the serial critical path.
            gx = (jnp.dot(seq, wih_ref[...],
                          preferred_element_type=jnp.float32)
                  + b_ref[...])                                       # (T*B, 4H)
            whh = whh_ref[...]                                        # (H, 4H)

            h = jnp.zeros((B, H), jnp.float32)
            c = jnp.zeros((B, H), jnp.float32)
            for t in range(T):  # unrolled: T is small and static
                gates = gx[t * B:(t + 1) * B, :] + jnp.dot(
                    h, whh, preferred_element_type=jnp.float32)      # (B, 4H)
                # Full-width activations (2 transcendental passes), then slice.
                sig = jax.nn.sigmoid(gates)
                tnh = jnp.tanh(gates)
                i_g = sig[:, 0 * H:1 * H]
                f_g = sig[:, 1 * H:2 * H]
                g_g = tnh[:, 2 * H:3 * H]
                o_g = sig[:, 3 * H:4 * H]
                c = f_g * c + i_g * g_g
                h = o_g * jnp.tanh(c)
                if not last_layer:
                    seq_ref[t * B:(t + 1) * B, :] = h
            if not last_layer:
                seq = seq_ref[...]                                    # (T*B, H)

        # Fused final Linear on the last time step's hidden state.
        out_ref[...] = (jnp.dot(h, fcw_ref[...],
                                preferred_element_type=jnp.float32)
                        + fcb_ref[...])

    return kernel


# ----------------------------------------------------------------------------
# Wrapper
# ----------------------------------------------------------------------------
def rnn_forward(params, x_btd):
    """Equivalent of RNN.forward: x (B, T, input_size) -> (B, num_classes)."""
    B, T, D = x_btd.shape
    H = params["lstm"][0]["w_hh_t"].shape[0]
    num_layers = len(params["lstm"])
    num_classes = params["fc_w_t"].shape[1]

    # Time-major flatten so time step t occupies rows [t*B, (t+1)*B).
    x_flat = jnp.transpose(x_btd, (1, 0, 2)).reshape(T * B, D)

    inputs = [x_flat, params["bn_scale"], params["bn_shift"]]
    for lp in params["lstm"]:
        inputs += [lp["w_ih_t"], lp["w_hh_t"], lp["b"]]
    inputs += [params["fc_w_t"], params["fc_b"]]

    kernel = _make_rnn_kernel(T, B, H, num_layers)
    return pl.pallas_call(
        kernel,
        out_shape=jax.ShapeDtypeStruct((B, num_classes), jnp.float32),
        scratch_shapes=[pltpu.VMEM((T * B, H), jnp.float32)],
    )(*inputs)


# ----------------------------------------------------------------------------
# Parameter init (PyTorch-style)
# ----------------------------------------------------------------------------
def init_params(key, input_size, hidden_size, num_layers, num_classes):
    kb_ = 1.0 / math.sqrt(hidden_size)
    params = {"lstm": []}

    # BatchNorm2d(input_size) eval-mode parameters (randomized so the
    # correctness check actually exercises the BN path).
    key, kg, kb, km, kv = jax.random.split(key, 5)
    gamma = jax.random.uniform(kg, (input_size,), jnp.float32, 0.5, 1.5)
    beta = 0.1 * jax.random.normal(kb, (input_size,), jnp.float32)
    running_mean = 0.1 * jax.random.normal(km, (input_size,), jnp.float32)
    running_var = jax.random.uniform(kv, (input_size,), jnp.float32, 0.5, 1.5)
    params["bn"] = {"gamma": gamma, "beta": beta,
                    "mean": running_mean, "var": running_var}
    scale = gamma / jnp.sqrt(running_var + BN_EPS)
    params["bn_scale"] = scale.reshape(1, -1)
    params["bn_shift"] = (beta - running_mean * scale).reshape(1, -1)

    for layer in range(num_layers):
        d_in = input_size if layer == 0 else hidden_size
        key, k1, k2, k3, k4 = jax.random.split(key, 5)
        w_ih_t = jax.random.uniform(k1, (d_in, 4 * hidden_size),
                                    jnp.float32, -kb_, kb_)
        w_hh_t = jax.random.uniform(k2, (hidden_size, 4 * hidden_size),
                                    jnp.float32, -kb_, kb_)
        b_ih = jax.random.uniform(k3, (4 * hidden_size,), jnp.float32, -kb_, kb_)
        b_hh = jax.random.uniform(k4, (4 * hidden_size,), jnp.float32, -kb_, kb_)
        params["lstm"].append({"w_ih_t": w_ih_t, "w_hh_t": w_hh_t,
                               "b": (b_ih + b_hh).reshape(1, -1)})

    kf = 1.0 / math.sqrt(hidden_size)
    key, k1, k2 = jax.random.split(key, 3)
    params["fc_w_t"] = jax.random.uniform(
        k1, (hidden_size, num_classes), jnp.float32, -kf, kf)
    params["fc_b"] = jax.random.uniform(
        k2, (num_classes,), jnp.float32, -kf, kf).reshape(1, -1)
    return params


# ----------------------------------------------------------------------------
# Pure-JAX reference (correctness check)
# ----------------------------------------------------------------------------
def rnn_reference(params, x_btd):
    bn = params["bn"]
    H = params["lstm"][0]["w_hh_t"].shape[0]
    B = x_btd.shape[0]

    x = (x_btd - bn["mean"]) / jnp.sqrt(bn["var"] + BN_EPS) * bn["gamma"] + bn["beta"]
    x = jnp.transpose(x, (1, 0, 2))  # (T, B, D) time-major

    for p in params["lstm"]:
        w_ih_t, w_hh_t, b = p["w_ih_t"], p["w_hh_t"], p["b"]

        def step(carry, x_t, w_ih_t=w_ih_t, w_hh_t=w_hh_t, b=b):
            h, c = carry
            gates = x_t @ w_ih_t + h @ w_hh_t + b
            i = jax.nn.sigmoid(gates[:, 0 * H:1 * H])
            f = jax.nn.sigmoid(gates[:, 1 * H:2 * H])
            g = jnp.tanh(gates[:, 2 * H:3 * H])
            o = jax.nn.sigmoid(gates[:, 3 * H:4 * H])
            c = f * c + i * g
            h = o * jnp.tanh(c)
            return (h, c), h

        h0 = jnp.zeros((B, H), jnp.float32)
        _, hs = jax.lax.scan(step, (h0, h0), x)
        x = hs

    return x[-1] @ params["fc_w_t"] + params["fc_b"]


# ----------------------------------------------------------------------------
if __name__ == "__main__":
    input_size = 16
    hidden_size = 32
    num_layers = 2
    num_classes = 10
    batch = 2
    seq = 8

    key = jax.random.PRNGKey(0)
    key, kx = jax.random.split(key)
    x = jax.random.normal(kx, (batch, seq, input_size), jnp.float32)

    params = init_params(key, input_size, hidden_size, num_layers, num_classes)

    fwd = jax.jit(rnn_forward)
    out = jax.block_until_ready(fwd(params, x))

    ref = rnn_reference(params, x)
    assert out.shape == (batch, num_classes)
    err = float(jnp.max(jnp.abs(out - ref)))
    assert jnp.allclose(out, ref, atol=1e-4, rtol=1e-4), f"mismatch vs reference (max abs err {err:.3e})"

    print("KERNEL_OK")
</pallas_src>

<mosaic_0001>
module attributes {stable_mosaic.version = 11 : i64} {
  func.func @kernel(%arg0: memref<16x16xf32, #tpu.memory_space<vmem>>, %arg1: memref<1x16xf32, #tpu.memory_space<vmem>>, %arg2: memref<1x16xf32, #tpu.memory_space<vmem>>, %arg3: memref<16x128xf32, #tpu.memory_space<vmem>>, %arg4: memref<32x128xf32, #tpu.memory_space<vmem>>, %arg5: memref<1x128xf32, #tpu.memory_space<vmem>>, %arg6: memref<32x128xf32, #tpu.memory_space<vmem>>, %arg7: memref<32x128xf32, #tpu.memory_space<vmem>>, %arg8: memref<1x128xf32, #tpu.memory_space<vmem>>, %arg9: memref<32x10xf32, #tpu.memory_space<vmem>>, %arg10: memref<1x10xf32, #tpu.memory_space<vmem>>, %arg11: memref<2x10xf32, #tpu.memory_space<vmem>>, %arg12: memref<16x32xf32, #tpu.memory_space<vmem>>) attributes {dimension_semantics = [], scalar_prefetch = 0 : i64, scratch_operands = 1 : i64, tpu.core_type = #tpu.core_type<tc>} {
    %c0 = arith.constant 0 : index
    %c0_0 = arith.constant 0 : index
    %0 = vector.load %arg0[%c0, %c0_0] : memref<16x16xf32, #tpu.memory_space<vmem>>, vector<16x16xf32>
    %c0_1 = arith.constant 0 : index
    %c0_2 = arith.constant 0 : index
    %1 = vector.load %arg1[%c0_1, %c0_2] : memref<1x16xf32, #tpu.memory_space<vmem>>, vector<1x16xf32>
    %2 = vector.broadcast %1 : vector<1x16xf32> to vector<16x16xf32>
    %3 = arith.mulf %0, %2 : vector<16x16xf32>
    %c0_3 = arith.constant 0 : index
    %c0_4 = arith.constant 0 : index
    %4 = vector.load %arg2[%c0_3, %c0_4] : memref<1x16xf32, #tpu.memory_space<vmem>>, vector<1x16xf32>
    %5 = vector.broadcast %4 : vector<1x16xf32> to vector<16x16xf32>
    %6 = arith.addf %3, %5 : vector<16x16xf32>
    %c0_5 = arith.constant 0 : index
    %c0_6 = arith.constant 0 : index
    %7 = vector.load %arg3[%c0_5, %c0_6] : memref<16x128xf32, #tpu.memory_space<vmem>>, vector<16x128xf32>
    %cst = arith.constant dense<0.000000e+00> : vector<16x128xf32>
    %8 = tpu.matmul %6, %7, %cst {dimension_numbers = #tpu.dot_dimension_numbers<[1], [0], [0], [1], [0, 0, 1, 1], [], []>} : vector<16x16xf32>, vector<16x128xf32>, vector<16x128xf32> -> vector<16x128xf32>
    %c0_7 = arith.constant 0 : index
    %c0_8 = arith.constant 0 : index
    %9 = vector.load %arg5[%c0_7, %c0_8] : memref<1x128xf32, #tpu.memory_space<vmem>>, vector<1x128xf32>
    %10 = vector.broadcast %9 : vector<1x128xf32> to vector<16x128xf32>
    %11 = arith.addf %8, %10 : vector<16x128xf32>
    %c0_9 = arith.constant 0 : index
    %c0_10 = arith.constant 0 : index
    %12 = vector.load %arg4[%c0_9, %c0_10] : memref<32x128xf32, #tpu.memory_space<vmem>>, vector<32x128xf32>
    %cst_11 = arith.constant 0.000000e+00 : f32
    %13 = vector.broadcast %cst_11 : f32 to vector<2x32xf32>
    %cst_12 = arith.constant 0.000000e+00 : f32
    %14 = vector.broadcast %cst_12 : f32 to vector<2x32xf32>
    %15 = vector.extract_strided_slice %11 {offsets = [0, 0], sizes = [2, 128], strides = [1, 1]} : vector<16x128xf32> to vector<2x128xf32>
    %cst_13 = arith.constant dense<0.000000e+00> : vector<2x128xf32>
    %16 = tpu.matmul %13, %12, %cst_13 {dimension_numbers = #tpu.dot_dimension_numbers<[1], [0], [0], [1], [0, 0, 1, 1], [], []>} : vector<2x32xf32>, vector<32x128xf32>, vector<2x128xf32> -> vector<2x128xf32>
    %17 = arith.addf %15, %16 : vector<2x128xf32>
    %18 = arith.negf %17 : vector<2x128xf32>
    %19 = math.exp %18 : vector<2x128xf32>
    %cst_14 = arith.constant 1.000000e+00 : f32
    %20 = vector.broadcast %cst_14 : f32 to vector<2x128xf32>
    %21 = arith.addf %20, %19 : vector<2x128xf32>
    %22 = arith.divf %20, %21 : vector<2x128xf32>
    %23 = math.tanh %17 : vector<2x128xf32>
    %24 = vector.extract_strided_slice %22 {offsets = [0, 0], sizes = [2, 32], strides = [1, 1]} : vector<2x128xf32> to vector<2x32xf32>
    %25 = vector.extract_strided_slice %22 {offsets = [0, 32], sizes = [2, 32], strides = [1, 1]} : vector<2x128xf32> to vector<2x32xf32>
    %26 = vector.extract_strided_slice %23 {offsets = [0, 64], sizes = [2, 32], strides = [1, 1]} : vector<2x128xf32> to vector<2x32xf32>
    %27 = vector.extract_strided_slice %22 {offsets = [0, 96], sizes = [2, 32], strides = [1, 1]} : vector<2x128xf32> to vector<2x32xf32>
    %28 = arith.mulf %25, %14 : vector<2x32xf32>
    %29 = arith.mulf %24, %26 : vector<2x32xf32>
    %30 = arith.addf %28, %29 : vector<2x32xf32>
    %31 = math.tanh %30 : vector<2x32xf32>
    %32 = arith.mulf %27, %31 : vector<2x32xf32>
    %c0_15 = arith.constant 0 : index
    %c0_16 = arith.constant 0 : index
    %33 = vector.load %arg12[%c0_15, %c0_16] : memref<16x32xf32, #tpu.memory_space<vmem>>, vector<2x32xf32>
    tpu.vector_store %arg12[%c0_15, %c0_16], %32 {strides = array<i32>} : memref<16x32xf32, #tpu.memory_space<vmem>>, vector<2x32xf32>,
    %34 = vector.extract_strided_slice %11 {offsets = [2, 0], sizes = [2, 128], strides = [1, 1]} : vector<16x128xf32> to vector<2x128xf32>
    %cst_17 = arith.constant dense<0.000000e+00> : vector<2x128xf32>
    %35 = tpu.matmul %32, %12, %cst_17 {dimension_numbers = #tpu.dot_dimension_numbers<[1], [0], [0], [1], [0, 0, 1, 1], [], []>} : vector<2x32xf32>, vector<32x128xf32>, vector<2x128xf32> -> vector<2x128xf32>
    %36 = arith.addf %34, %35 : vector<2x128xf32>
    %37 = arith.negf %36 : vector<2x128xf32>
    %38 = math.exp %37 : vector<2x128xf32>
    %cst_18 = arith.constant 1.000000e+00 : f32
    %39 = vector.broadcast %cst_18 : f32 to vector<2x128xf32>
    %40 = arith.addf %39, %38 : vector<2x128xf32>
    %41 = arith.divf %39, %40 : vector<2x128xf32>
    %42 = math.tanh %36 : vector<2x128xf32>
    %43 = vector.extract_strided_slice %41 {offsets = [0, 0], sizes = [2, 32], strides = [1, 1]} : vector<2x128xf32> to vector<2x32xf32>
    %44 = vector.extract_strided_slice %41 {offsets = [0, 32], sizes = [2, 32], strides = [1, 1]} : vector<2x128xf32> to vector<2x32xf32>
    %45 = vector.extract_strided_slice %42 {offsets = [0, 64], sizes = [2, 32], strides = [1, 1]} : vector<2x128xf32> to vector<2x32xf32>
    %46 = vector.extract_strided_slice %41 {offsets = [0, 96], sizes = [2, 32], strides = [1, 1]} : vector<2x128xf32> to vector<2x32xf32>
    %47 = arith.mulf %44, %30 : vector<2x32xf32>
    %48 = arith.mulf %43, %45 : vector<2x32xf32>
    %49 = arith.addf %47, %48 : vector<2x32xf32>
    %50 = math.tanh %49 : vector<2x32xf32>
    %51 = arith.mulf %46, %50 : vector<2x32xf32>
    %c2 = arith.constant 2 : index
    %c0_19 = arith.constant 0 : index
    %52 = vector.load %arg12[%c2, %c0_19] : memref<16x32xf32, #tpu.memory_space<vmem>>, vector<2x32xf32>
    tpu.vector_store %arg12[%c2, %c0_19], %51 {strides = array<i32>} : memref<16x32xf32, #tpu.memory_space<vmem>>, vector<2x32xf32>,
    %53 = vector.extract_strided_slice %11 {offsets = [4, 0], sizes = [2, 128], strides = [1, 1]} : vector<16x128xf32> to vector<2x128xf32>
    %cst_20 = arith.constant dense<0.000000e+00> : vector<2x128xf32>
    %54 = tpu.matmul %51, %12, %cst_20 {dimension_numbers = #tpu.dot_dimension_numbers<[1], [0], [0], [1], [0, 0, 1, 1], [], []>} : vector<2x32xf32>, vector<32x128xf32>, vector<2x128xf32> -> vector<2x128xf32>
    %55 = arith.addf %53, %54 : vector<2x128xf32>
    %56 = arith.negf %55 : vector<2x128xf32>
    %57 = math.exp %56 : vector<2x128xf32>
    %cst_21 = arith.constant 1.000000e+00 : f32
    %58 = vector.broadcast %cst_21 : f32 to vector<2x128xf32>
    %59 = arith.addf %58, %57 : vector<2x128xf32>
    %60 = arith.divf %58, %59 : vector<2x128xf32>
    %61 = math.tanh %55 : vector<2x128xf32>
    %62 = vector.extract_strided_slice %60 {offsets = [0, 0], sizes = [2, 32], strides = [1, 1]} : vector<2x128xf32> to vector<2x32xf32>
    %63 = vector.extract_strided_slice %60 {offsets = [0, 32], sizes = [2, 32], strides = [1, 1]} : vector<2x128xf32> to vector<2x32xf32>
    %64 = vector.extract_strided_slice %61 {offsets = [0, 64], sizes = [2, 32], strides = [1, 1]} : vector<2x128xf32> to vector<2x32xf32>
    %65 = vector.extract_strided_slice %60 {offsets = [0, 96], sizes = [2, 32], strides = [1, 1]} : vector<2x128xf32> to vector<2x32xf32>
    %66 = arith.mulf %63, %49 : vector<2x32xf32>
    %67 = arith.mulf %62, %64 : vector<2x32xf32>
    %68 = arith.addf %66, %67 : vector<2x32xf32>
    %69 = math.tanh %68 : vector<2x32xf32>
    %70 = arith.mulf %65, %69 : vector<2x32xf32>
    %c4 = arith.constant 4 : index
    %c0_22 = arith.constant 0 : index
    %71 = vector.load %arg12[%c4, %c0_22] : memref<16x32xf32, #tpu.memory_space<vmem>>, vector<2x32xf32>
    tpu.vector_store %arg12[%c4, %c0_22], %70 {strides = array<i32>} : memref<16x32xf32, #tpu.memory_space<vmem>>, vector<2x32xf32>,
    %72 = vector.extract_strided_slice %11 {offsets = [6, 0], sizes = [2, 128], strides = [1, 1]} : vector<16x128xf32> to vector<2x128xf32>
    %cst_23 = arith.constant dense<0.000000e+00> : vector<2x128xf32>
    %73 = tpu.matmul %70, %12, %cst_23 {dimension_numbers = #tpu.dot_dimension_numbers<[1], [0], [0], [1], [0, 0, 1, 1], [], []>} : vector<2x32xf32>, vector<32x128xf32>, vector<2x128xf32> -> vector<2x128xf32>
    %74 = arith.addf %72, %73 : vector<2x128xf32>
    %75 = arith.negf %74 : vector<2x128xf32>
    %76 = math.exp %75 : vector<2x128xf32>
    %cst_24 = arith.constant 1.000000e+00 : f32
    %77 = vector.broadcast %cst_24 : f32 to vector<2x128xf32>
    %78 = arith.addf %77, %76 : vector<2x128xf32>
    %79 = arith.divf %77, %78 : vector<2x128xf32>
    %80 = math.tanh %74 : vector<2x128xf32>
    %81 = vector.extract_strided_slice %79 {offsets = [0, 0], sizes = [2, 32], strides = [1, 1]} : vector<2x128xf32> to vector<2x32xf32>
    %82 = vector.extract_strided_slice %79 {offsets = [0, 32], sizes = [2, 32], strides = [1, 1]} : vector<2x128xf32> to vector<2x32xf32>
    %83 = vector.extract_strided_slice %80 {offsets = [0, 64], sizes = [2, 32], strides = [1, 1]} : vector<2x128xf32> to vector<2x32xf32>
    %84 = vector.extract_strided_slice %79 {offsets = [0, 96], sizes = [2, 32], strides = [1, 1]} : vector<2x128xf32> to vector<2x32xf32>
    %85 = arith.mulf %82, %68 : vector<2x32xf32>
    %86 = arith.mulf %81, %83 : vector<2x32xf32>
    %87 = arith.addf %85, %86 : vector<2x32xf32>
    %88 = math.tanh %87 : vector<2x32xf32>
    %89 = arith.mulf %84, %88 : vector<2x32xf32>
    %c6 = arith.constant 6 : index
    %c0_25 = arith.constant 0 : index
    %90 = vector.load %arg12[%c6, %c0_25] : memref<16x32xf32, #tpu.memory_space<vmem>>, vector<2x32xf32>
    tpu.vector_store %arg12[%c6, %c0_25], %89 {strides = array<i32>} : memref<16x32xf32, #tpu.memory_space<vmem>>, vector<2x32xf32>,
    %91 = vector.extract_strided_slice %11 {offsets = [8, 0], sizes = [2, 128], strides = [1, 1]} : vector<16x128xf32> to vector<2x128xf32>
    %cst_26 = arith.constant dense<0.000000e+00> : vector<2x128xf32>
    %92 = tpu.matmul %89, %12, %cst_26 {dimension_numbers = #tpu.dot_dimension_numbers<[1], [0], [0], [1], [0, 0, 1, 1], [], []>} : vector<2x32xf32>, vector<32x128xf32>, vector<2x128xf32> -> vector<2x128xf32>
    %93 = arith.addf %91, %92 : vector<2x128xf32>
    %94 = arith.negf %93 : vector<2x128xf32>
    %95 = math.exp %94 : vector<2x128xf32>
    %cst_27 = arith.constant 1.000000e+00 : f32
    %96 = vector.broadcast %cst_27 : f32 to vector<2x128xf32>
    %97 = arith.addf %96, %95 : vector<2x128xf32>
    %98 = arith.divf %96, %97 : vector<2x128xf32>
    %99 = math.tanh %93 : vector<2x128xf32>
    %100 = vector.extract_strided_slice %98 {offsets = [0, 0], sizes = [2, 32], strides = [1, 1]} : vector<2x128xf32> to vector<2x32xf32>
    %101 = vector.extract_strided_slice %98 {offsets = [0, 32], sizes = [2, 32], strides = [1, 1]} : vector<2x128xf32> to vector<2x32xf32>
    %102 = vector.extract_strided_slice %99 {offsets = [0, 64], sizes = [2, 32], strides = [1, 1]} : vector<2x128xf32> to vector<2x32xf32>
    %103 = vector.extract_strided_slice %98 {offsets = [0, 96], sizes = [2, 32], strides = [1, 1]} : vector<2x128xf32> to vector<2x32xf32>
    %104 = arith.mulf %101, %87 : vector<2x32xf32>
    %105 = arith.mulf %100, %102 : vector<2x32xf32>
    %106 = arith.addf %104, %105 : vector<2x32xf32>
    %107 = math.tanh %106 : vector<2x32xf32>
    %108 = arith.mulf %103, %107 : vector<2x32xf32>
    %c8 = arith.constant 8 : index
    %c0_28 = arith.constant 0 : index
    %109 = vector.load %arg12[%c8, %c0_28] : memref<16x32xf32, #tpu.memory_space<vmem>>, vector<2x32xf32>
    tpu.vector_store %arg12[%c8, %c0_28], %108 {strides = array<i32>} : memref<16x32xf32, #tpu.memory_space<vmem>>, vector<2x32xf32>,
    %110 = vector.extract_strided_slice %11 {offsets = [10, 0], sizes = [2, 128], strides = [1, 1]} : vector<16x128xf32> to vector<2x128xf32>
    %cst_29 = arith.constant dense<0.000000e+00> : vector<2x128xf32>
    %111 = tpu.matmul %108, %12, %cst_29 {dimension_numbers = #tpu.dot_dimension_numbers<[1], [0], [0], [1], [0, 0, 1, 1], [], []>} : vector<2x32xf32>, vector<32x128xf32>, vector<2x128xf32> -> vector<2x128xf32>
    %112 = arith.addf %110, %111 : vector<2x128xf32>
    %113 = arith.negf %112 : vector<2x128xf32>
    %114 = math.exp %113 : vector<2x128xf32>
    %cst_30 = arith.constant 1.000000e+00 : f32
    %115 = vector.broadcast %cst_30 : f32 to vector<2x128xf32>
    %116 = arith.addf %115, %114 : vector<2x128xf32>
    %117 = arith.divf %115, %116 : vector<2x128xf32>
    %118 = math.tanh %112 : vector<2x128xf32>
    %119 = vector.extract_strided_slice %117 {offsets = [0, 0], sizes = [2, 32], strides = [1, 1]} : vector<2x128xf32> to vector<2x32xf32>
    %120 = vector.extract_strided_slice %117 {offsets = [0, 32], sizes = [2, 32], strides = [1, 1]} : vector<2x128xf32> to vector<2x32xf32>
    %121 = vector.extract_strided_slice %118 {offsets = [0, 64], sizes = [2, 32], strides = [1, 1]} : vector<2x128xf32> to vector<2x32xf32>
    %122 = vector.extract_strided_slice %117 {offsets = [0, 96], sizes = [2, 32], strides = [1, 1]} : vector<2x128xf32> to vector<2x32xf32>
    %123 = arith.mulf %120, %106 : vector<2x32xf32>
    %124 = arith.mulf %119, %121 : vector<2x32xf32>
    %125 = arith.addf %123, %124 : vector<2x32xf32>
    %126 = math.tanh %125 : vector<2x32xf32>
    %127 = arith.mulf %122, %126 : vector<2x32xf32>
    %c10 = arith.constant 10 : index
    %c0_31 = arith.constant 0 : index
    %128 = vector.load %arg12[%c10, %c0_31] : memref<16x32xf32, #tpu.memory_space<vmem>>, vector<2x32xf32>
    tpu.vector_store %arg12[%c10, %c0_31], %127 {strides = array<i32>} : memref<16x32xf32, #tpu.memory_space<vmem>>, vector<2x32xf32>,
    %129 = vector.extract_strided_slice %11 {offsets = [12, 0], sizes = [2, 128], strides = [1, 1]} : vector<16x128xf32> to vector<2x128xf32>
    %cst_32 = arith.constant dense<0.000000e+00> : vector<2x128xf32>
    %130 = tpu.matmul %127, %12, %cst_32 {dimension_numbers = #tpu.dot_dimension_numbers<[1], [0], [0], [1], [0, 0, 1, 1], [], []>} : vector<2x32xf32>, vector<32x128xf32>, vector<2x128xf32> -> vector<2x128xf32>
    %131 = arith.addf %129, %130 : vector<2x128xf32>
    %132 = arith.negf %131 : vector<2x128xf32>
    %133 = math.exp %132 : vector<2x128xf32>
    %cst_33 = arith.constant 1.000000e+00 : f32
    %134 = vector.broadcast %cst_33 : f32 to vector<2x128xf32>
    %135 = arith.addf %134, %133 : vector<2x128xf32>
    %136 = arith.divf %134, %135 : vector<2x128xf32>
    %137 = math.tanh %131 : vector<2x128xf32>
    %138 = vector.extract_strided_slice %136 {offsets = [0, 0], sizes = [2, 32], strides = [1, 1]} : vector<2x128xf32> to vector<2x32xf32>
    %139 = vector.extract_strided_slice %136 {offsets = [0, 32], sizes = [2, 32], strides = [1, 1]} : vector<2x128xf32> to vector<2x32xf32>
    %140 = vector.extract_strided_slice %137 {offsets = [0, 64], sizes = [2, 32], strides = [1, 1]} : vector<2x128xf32> to vector<2x32xf32>
    %141 = vector.extract_strided_slice %136 {offsets = [0, 96], sizes = [2, 32], strides = [1, 1]} : vector<2x128xf32> to vector<2x32xf32>
    %142 = arith.mulf %139, %125 : vector<2x32xf32>
    %143 = arith.mulf %138, %140 : vector<2x32xf32>
    %144 = arith.addf %142, %143 : vector<2x32xf32>
    %145 = math.tanh %144 : vector<2x32xf32>
    %146 = arith.mulf %141, %145 : vector<2x32xf32>
    %c12 = arith.constant 12 : index
    %c0_34 = arith.constant 0 : index
    %147 = vector.load %arg12[%c12, %c0_34] : memref<16x32xf32, #tpu.memory_space<vmem>>, vector<2x32xf32>
    tpu.vector_store %arg12[%c12, %c0_34], %146 {strides = array<i32>} : memref<16x32xf32, #tpu.memory_space<vmem>>, vector<2x32xf32>,
    %148 = vector.extract_strided_slice %11 {offsets = [14, 0], sizes = [2, 128], strides = [1, 1]} : vector<16x128xf32> to vector<2x128xf32>
    %cst_35 = arith.constant dense<0.000000e+00> : vector<2x128xf32>
    %149 = tpu.matmul %146, %12, %cst_35 {dimension_numbers = #tpu.dot_dimension_numbers<[1], [0], [0], [1], [0, 0, 1, 1], [], []>} : vector<2x32xf32>, vector<32x128xf32>, vector<2x128xf32> -> vector<2x128xf32>
    %150 = arith.addf %148, %149 : vector<2x128xf32>
    %151 = arith.negf %150 : vector<2x128xf32>
    %152 = math.exp %151 : vector<2x128xf32>
    %cst_36 = arith.constant 1.000000e+00 : f32
    %153 = vector.broadcast %cst_36 : f32 to vector<2x128xf32>
    %154 = arith.addf %153, %152 : vector<2x128xf32>
    %155 = arith.divf %153, %154 : vector<2x128xf32>
    %156 = math.tanh %150 : vector<2x128xf32>
    %157 = vector.extract_strided_slice %155 {offsets = [0, 0], sizes = [2, 32], strides = [1, 1]} : vector<2x128xf32> to vector<2x32xf32>
    %158 = vector.extract_strided_slice %155 {offsets = [0, 32], sizes = [2, 32], strides = [1, 1]} : vector<2x128xf32> to vector<2x32xf32>
    %159 = vector.extract_strided_slice %156 {offsets = [0, 64], sizes = [2, 32], strides = [1, 1]} : vector<2x128xf32> to vector<2x32xf32>
    %160 = vector.extract_strided_slice %155 {offsets = [0, 96], sizes = [2, 32], strides = [1, 1]} : vector<2x128xf32> to vector<2x32xf32>
    %161 = arith.mulf %158, %144 : vector<2x32xf32>
    %162 = arith.mulf %157, %159 : vector<2x32xf32>
    %163 = arith.addf %161, %162 : vector<2x32xf32>
    %164 = math.tanh %163 : vector<2x32xf32>
    %165 = arith.mulf %160, %164 : vector<2x32xf32>
    %c14 = arith.constant 14 : index
    %c0_37 = arith.constant 0 : index
    %166 = vector.load %arg12[%c14, %c0_37] : memref<16x32xf32, #tpu.memory_space<vmem>>, vector<2x32xf32>
    tpu.vector_store %arg12[%c14, %c0_37], %165 {strides = array<i32>} : memref<16x32xf32, #tpu.memory_space<vmem>>, vector<2x32xf32>,
    %c0_38 = arith.constant 0 : index
    %c0_39 = arith.constant 0 : index
    %167 = vector.load %arg12[%c0_38, %c0_39] : memref<16x32xf32, #tpu.memory_space<vmem>>, vector<16x32xf32>
    %c0_40 = arith.constant 0 : index
    %c0_41 = arith.constant 0 : index
    %168 = vector.load %arg6[%c0_40, %c0_41] : memref<32x128xf32, #tpu.memory_space<vmem>>, vector<32x128xf32>
    %cst_42 = arith.constant dense<0.000000e+00> : vector<16x128xf32>
    %169 = tpu.matmul %167, %168, %cst_42 {dimension_numbers = #tpu.dot_dimension_numbers<[1], [0], [0], [1], [0, 0, 1, 1], [], []>} : vector<16x32xf32>, vector<32x128xf32>, vector<16x128xf32> -> vector<16x128xf32>
    %c0_43 = arith.constant 0 : index
    %c0_44 = arith.constant 0 : index
    %170 = vector.load %arg8[%c0_43, %c0_44] : memref<1x128xf32, #tpu.memory_space<vmem>>, vector<1x128xf32>
    %171 = vector.broadcast %170 : vector<1x128xf32> to vector<16x128xf32>
    %172 = arith.addf %169, %171 : vector<16x128xf32>
    %c0_45 = arith.constant 0 : index
    %c0_46 = arith.constant 0 : index
    %173 = vector.load %arg7[%c0_45, %c0_46] : memref<32x128xf32, #tpu.memory_space<vmem>>, vector<32x128xf32>
    %cst_47 = arith.constant 0.000000e+00 : f32
    %174 = vector.broadcast %cst_47 : f32 to vector<2x32xf32>
    %cst_48 = arith.constant 0.000000e+00 : f32
    %175 = vector.broadcast %cst_48 : f32 to vector<2x32xf32>
    %176 = vector.extract_strided_slice %172 {offsets = [0, 0], sizes = [2, 128], strides = [1, 1]} : vector<16x128xf32> to vector<2x128xf32>
    %cst_49 = arith.constant dense<0.000000e+00> : vector<2x128xf32>
    %177 = tpu.matmul %174, %173, %cst_49 {dimension_numbers = #tpu.dot_dimension_numbers<[1], [0], [0], [1], [0, 0, 1, 1], [], []>} : vector<2x32xf32>, vector<32x128xf32>, vector<2x128xf32> -> vector<2x128xf32>
    %178 = arith.addf %176, %177 : vector<2x128xf32>
    %179 = arith.negf %178 : vector<2x128xf32>
    %180 = math.exp %179 : vector<2x128xf32>
    %cst_50 = arith.constant 1.000000e+00 : f32
    %181 = vector.broadcast %cst_50 : f32 to vector<2x128xf32>
    %182 = arith.addf %181, %180 : vector<2x128xf32>
    %183 = arith.divf %181, %182 : vector<2x128xf32>
    %184 = math.tanh %178 : vector<2x128xf32>
    %185 = vector.extract_strided_slice %183 {offsets = [0, 0], sizes = [2, 32], strides = [1, 1]} : vector<2x128xf32> to vector<2x32xf32>
    %186 = vector.extract_strided_slice %183 {offsets = [0, 32], sizes = [2, 32], strides = [1, 1]} : vector<2x128xf32> to vector<2x32xf32>
    %187 = vector.extract_strided_slice %184 {offsets = [0, 64], sizes = [2, 32], strides = [1, 1]} : vector<2x128xf32> to vector<2x32xf32>
    %188 = vector.extract_strided_slice %183 {offsets = [0, 96], sizes = [2, 32], strides = [1, 1]} : vector<2x128xf32> to vector<2x32xf32>
    %189 = arith.mulf %186, %175 : vector<2x32xf32>
    %190 = arith.mulf %185, %187 : vector<2x32xf32>
    %191 = arith.addf %189, %190 : vector<2x32xf32>
    %192 = math.tanh %191 : vector<2x32xf32>
    %193 = arith.mulf %188, %192 : vector<2x32xf32>
    %194 = vector.extract_strided_slice %172 {offsets = [2, 0], sizes = [2, 128], strides = [1, 1]} : vector<16x128xf32> to vector<2x128xf32>
    %cst_51 = arith.constant dense<0.000000e+00> : vector<2x128xf32>
    %195 = tpu.matmul %193, %173, %cst_51 {dimension_numbers = #tpu.dot_dimension_numbers<[1], [0], [0], [1], [0, 0, 1, 1], [], []>} : vector<2x32xf32>, vector<32x128xf32>, vector<2x128xf32> -> vector<2x128xf32>
    %196 = arith.addf %194, %195 : vector<2x128xf32>
    %197 = arith.negf %196 : vector<2x128xf32>
    %198 = math.exp %197 : vector<2x128xf32>
    %cst_52 = arith.constant 1.000000e+00 : f32
    %199 = vector.broadcast %cst_52 : f32 to vector<2x128xf32>
    %200 = arith.addf %199, %198 : vector<2x128xf32>
    %201 = arith.divf %199, %200 : vector<2x128xf32>
    %202 = math.tanh %196 : vector<2x128xf32>
    %203 = vector.extract_strided_slice %201 {offsets = [0, 0], sizes = [2, 32], strides = [1, 1]} : vector<2x128xf32> to vector<2x32xf32>
    %204 = vector.extract_strided_slice %201 {offsets = [0, 32], sizes = [2, 32], strides = [1, 1]} : vector<2x128xf32> to vector<2x32xf32>
    %205 = vector.extract_strided_slice %202 {offsets = [0, 64], sizes = [2, 32], strides = [1, 1]} : vector<2x128xf32> to vector<2x32xf32>
    %206 = vector.extract_strided_slice %201 {offsets = [0, 96], sizes = [2, 32], strides = [1, 1]} : vector<2x128xf32> to vector<2x32xf32>
    %207 = arith.mulf %204, %191 : vector<2x32xf32>
    %208 = arith.mulf %203, %205 : vector<2x32xf32>
    %209 = arith.addf %207, %208 : vector<2x32xf32>
    %210 = math.tanh %209 : vector<2x32xf32>
    %211 = arith.mulf %206, %210 : vector<2x32xf32>
    %212 = vector.extract_strided_slice %172 {offsets = [4, 0], sizes = [2, 128], strides = [1, 1]} : vector<16x128xf32> to vector<2x128xf32>
    %cst_53 = arith.constant dense<0.000000e+00> : vector<2x128xf32>
    %213 = tpu.matmul %211, %173, %cst_53 {dimension_numbers = #tpu.dot_dimension_numbers<[1], [0], [0], [1], [0, 0, 1, 1], [], []>} : vector<2x32xf32>, vector<32x128xf32>, vector<2x128xf32> -> vector<2x128xf32>
    %214 = arith.addf %212, %213 : vector<2x128xf32>
    %215 = arith.negf %214 : vector<2x128xf32>
    %216 = math.exp %215 : vector<2x128xf32>
    %cst_54 = arith.constant 1.000000e+00 : f32
    %217 = vector.broadcast %cst_54 : f32 to vector<2x128xf32>
    %218 = arith.addf %217, %216 : vector<2x128xf32>
    %219 = arith.divf %217, %218 : vector<2x128xf32>
    %220 = math.tanh %214 : vector<2x128xf32>
    %221 = vector.extract_strided_slice %219 {offsets = [0, 0], sizes = [2, 32], strides = [1, 1]} : vector<2x128xf32> to vector<2x32xf32>
    %222 = vector.extract_strided_slice %219 {offsets = [0, 32], sizes = [2, 32], strides = [1, 1]} : vector<2x128xf32> to vector<2x32xf32>
    %223 = vector.extract_strided_slice %220 {offsets = [0, 64], sizes = [2, 32], strides = [1, 1]} : vector<2x128xf32> to vector<2x32xf32>
    %224 = vector.extract_strided_slice %219 {offsets = [0, 96], sizes = [2, 32], strides = [1, 1]} : vector<2x128xf32> to vector<2x32xf32>
    %225 = arith.mulf %222, %209 : vector<2x32xf32>
    %226 = arith.mulf %221, %223 : vector<2x32xf32>
    %227 = arith.addf %225, %226 : vector<2x32xf32>
    %228 = math.tanh %227 : vector<2x32xf32>
    %229 = arith.mulf %224, %228 : vector<2x32xf32>
    %230 = vector.extract_strided_slice %172 {offsets = [6, 0], sizes = [2, 128], strides = [1, 1]} : vector<16x128xf32> to vector<2x128xf32>
    %cst_55 = arith.constant dense<0.000000e+00> : vector<2x128xf32>
    %231 = tpu.matmul %229, %173, %cst_55 {dimension_numbers = #tpu.dot_dimension_numbers<[1], [0], [0], [1], [0, 0, 1, 1], [], []>} : vector<2x32xf32>, vector<32x128xf32>, vector<2x128xf32> -> vector<2x128xf32>
    %232 = arith.addf %230, %231 : vector<2x128xf32>
    %233 = arith.negf %232 : vector<2x128xf32>
    %234 = math.exp %233 : vector<2x128xf32>
    %cst_56 = arith.constant 1.000000e+00 : f32
    %235 = vector.broadcast %cst_56 : f32 to vector<2x128xf32>
    %236 = arith.addf %235, %234 : vector<2x128xf32>
    %237 = arith.divf %235, %236 : vector<2x128xf32>
    %238 = math.tanh %232 : vector<2x128xf32>
    %239 = vector.extract_strided_slice %237 {offsets = [0, 0], sizes = [2, 32], strides = [1, 1]} : vector<2x128xf32> to vector<2x32xf32>
    %240 = vector.extract_strided_slice %237 {offsets = [0, 32], sizes = [2, 32], strides = [1, 1]} : vector<2x128xf32> to vector<2x32xf32>
    %241 = vector.extract_strided_slice %238 {offsets = [0, 64], sizes = [2, 32], strides = [1, 1]} : vector<2x128xf32> to vector<2x32xf32>
    %242 = vector.extract_strided_slice %237 {offsets = [0, 96], sizes = [2, 32], strides = [1, 1]} : vector<2x128xf32> to vector<2x32xf32>
    %243 = arith.mulf %240, %227 : vector<2x32xf32>
    %244 = arith.mulf %239, %241 : vector<2x32xf32>
    %245 = arith.addf %243, %244 : vector<2x32xf32>
    %246 = math.tanh %245 : vector<2x32xf32>
    %247 = arith.mulf %242, %246 : vector<2x32xf32>
    %248 = vector.extract_strided_slice %172 {offsets = [8, 0], sizes = [2, 128], strides = [1, 1]} : vector<16x128xf32> to vector<2x128xf32>
    %cst_57 = arith.constant dense<0.000000e+00> : vector<2x128xf32>
    %249 = tpu.matmul %247, %173, %cst_57 {dimension_numbers = #tpu.dot_dimension_numbers<[1], [0], [0], [1], [0, 0, 1, 1], [], []>} : vector<2x32xf32>, vector<32x128xf32>, vector<2x128xf32> -> vector<2x128xf32>
    %250 = arith.addf %248, %249 : vector<2x128xf32>
    %251 = arith.negf %250 : vector<2x128xf32>
    %252 = math.exp %251 : vector<2x128xf32>
    %cst_58 = arith.constant 1.000000e+00 : f32
    %253 = vector.broadcast %cst_58 : f32 to vector<2x128xf32>
    %254 = arith.addf %253, %252 : vector<2x128xf32>
    %255 = arith.divf %253, %254 : vector<2x128xf32>
    %256 = math.tanh %250 : vector<2x128xf32>
    %257 = vector.extract_strided_slice %255 {offsets = [0, 0], sizes = [2, 32], strides = [1, 1]} : vector<2x128xf32> to vector<2x32xf32>
    %258 = vector.extract_strided_slice %255 {offsets = [0, 32], sizes = [2, 32], strides = [1, 1]} : vector<2x128xf32> to vector<2x32xf32>
    %259 = vector.extract_strided_slice %256 {offsets = [0, 64], sizes = [2, 32], strides = [1, 1]} : vector<2x128xf32> to vector<2x32xf32>
    %260 = vector.extract_strided_slice %255 {offsets = [0, 96], sizes = [2, 32], strides = [1, 1]} : vector<2x128xf32> to vector<2x32xf32>
    %261 = arith.mulf %258, %245 : vector<2x32xf32>
    %262 = arith.mulf %257, %259 : vector<2x32xf32>
    %263 = arith.addf %261, %262 : vector<2x32xf32>
    %264 = math.tanh %263 : vector<2x32xf32>
    %265 = arith.mulf %260, %264 : vector<2x32xf32>
    %266 = vector.extract_strided_slice %172 {offsets = [10, 0], sizes = [2, 128], strides = [1, 1]} : vector<16x128xf32> to vector<2x128xf32>
    %cst_59 = arith.constant dense<0.000000e+00> : vector<2x128xf32>
    %267 = tpu.matmul %265, %173, %cst_59 {dimension_numbers = #tpu.dot_dimension_numbers<[1], [0], [0], [1], [0, 0, 1, 1], [], []>} : vector<2x32xf32>, vector<32x128xf32>, vector<2x128xf32> -> vector<2x128xf32>
    %268 = arith.addf %266, %267 : vector<2x128xf32>
    %269 = arith.negf %268 : vector<2x128xf32>
    %270 = math.exp %269 : vector<2x128xf32>
    %cst_60 = arith.constant 1.000000e+00 : f32
    %271 = vector.broadcast %cst_60 : f32 to vector<2x128xf32>
    %272 = arith.addf %271, %270 : vector<2x128xf32>
    %273 = arith.divf %271, %272 : vector<2x128xf32>
    %274 = math.tanh %268 : vector<2x128xf32>
    %275 = vector.extract_strided_slice %273 {offsets = [0, 0], sizes = [2, 32], strides = [1, 1]} : vector<2x128xf32> to vector<2x32xf32>
    %276 = vector.extract_strided_slice %273 {offsets = [0, 32], sizes = [2, 32], strides = [1, 1]} : vector<2x128xf32> to vector<2x32xf32>
    %277 = vector.extract_strided_slice %274 {offsets = [0, 64], sizes = [2, 32], strides = [1, 1]} : vector<2x128xf32> to vector<2x32xf32>
    %278 = vector.extract_strided_slice %273 {offsets = [0, 96], sizes = [2, 32], strides = [1, 1]} : vector<2x128xf32> to vector<2x32xf32>
    %279 = arith.mulf %276, %263 : vector<2x32xf32>
    %280 = arith.mulf %275, %277 : vector<2x32xf32>
    %281 = arith.addf %279, %280 : vector<2x32xf32>
    %282 = math.tanh %281 : vector<2x32xf32>
    %283 = arith.mulf %278, %282 : vector<2x32xf32>
    %284 = vector.extract_strided_slice %172 {offsets = [12, 0], sizes = [2, 128], strides = [1, 1]} : vector<16x128xf32> to vector<2x128xf32>
    %cst_61 = arith.constant dense<0.000000e+00> : vector<2x128xf32>
    %285 = tpu.matmul %283, %173, %cst_61 {dimension_numbers = #tpu.dot_dimension_numbers<[1], [0], [0], [1], [0, 0, 1, 1], [], []>} : vector<2x32xf32>, vector<32x128xf32>, vector<2x128xf32> -> vector<2x128xf32>
    %286 = arith.addf %284, %285 : vector<2x128xf32>
    %287 = arith.negf %286 : vector<2x128xf32>
    %288 = math.exp %287 : vector<2x128xf32>
    %cst_62 = arith.constant 1.000000e+00 : f32
    %289 = vector.broadcast %cst_62 : f32 to vector<2x128xf32>
    %290 = arith.addf %289, %288 : vector<2x128xf32>
    %291 = arith.divf %289, %290 : vector<2x128xf32>
    %292 = math.tanh %286 : vector<2x128xf32>
    %293 = vector.extract_strided_slice %291 {offsets = [0, 0], sizes = [2, 32], strides = [1, 1]} : vector<2x128xf32> to vector<2x32xf32>
    %294 = vector.extract_strided_slice %291 {offsets = [0, 32], sizes = [2, 32], strides = [1, 1]} : vector<2x128xf32> to vector<2x32xf32>
    %295 = vector.extract_strided_slice %292 {offsets = [0, 64], sizes = [2, 32], strides = [1, 1]} : vector<2x128xf32> to vector<2x32xf32>
    %296 = vector.extract_strided_slice %291 {offsets = [0, 96], sizes = [2, 32], strides = [1, 1]} : vector<2x128xf32> to vector<2x32xf32>
    %297 = arith.mulf %294, %281 : vector<2x32xf32>
    %298 = arith.mulf %293, %295 : vector<2x32xf32>
    %299 = arith.addf %297, %298 : vector<2x32xf32>
    %300 = math.tanh %299 : vector<2x32xf32>
    %301 = arith.mulf %296, %300 : vector<2x32xf32>
    %302 = vector.extract_strided_slice %172 {offsets = [14, 0], sizes = [2, 128], strides = [1, 1]} : vector<16x128xf32> to vector<2x128xf32>
    %cst_63 = arith.constant dense<0.000000e+00> : vector<2x128xf32>
    %303 = tpu.matmul %301, %173, %cst_63 {dimension_numbers = #tpu.dot_dimension_numbers<[1], [0], [0], [1], [0, 0, 1, 1], [], []>} : vector<2x32xf32>, vector<32x128xf32>, vector<2x128xf32> -> vector<2x128xf32>
    %304 = arith.addf %302, %303 : vector<2x128xf32>
    %305 = arith.negf %304 : vector<2x128xf32>
    %306 = math.exp %305 : vector<2x128xf32>
    %cst_64 = arith.constant 1.000000e+00 : f32
    %307 = vector.broadcast %cst_64 : f32 to vector<2x128xf32>
    %308 = arith.addf %307, %306 : vector<2x128xf32>
    %309 = arith.divf %307, %308 : vector<2x128xf32>
    %310 = math.tanh %304 : vector<2x128xf32>
    %311 = vector.extract_strided_slice %309 {offsets = [0, 0], sizes = [2, 32], strides = [1, 1]} : vector<2x128xf32> to vector<2x32xf32>
    %312 = vector.extract_strided_slice %309 {offsets = [0, 32], sizes = [2, 32], strides = [1, 1]} : vector<2x128xf32> to vector<2x32xf32>
    %313 = vector.extract_strided_slice %310 {offsets = [0, 64], sizes = [2, 32], strides = [1, 1]} : vector<2x128xf32> to vector<2x32xf32>
    %314 = vector.extract_strided_slice %309 {offsets = [0, 96], sizes = [2, 32], strides = [1, 1]} : vector<2x128xf32> to vector<2x32xf32>
    %315 = arith.mulf %312, %299 : vector<2x32xf32>
    %316 = arith.mulf %311, %313 : vector<2x32xf32>
    %317 = arith.addf %315, %316 : vector<2x32xf32>
    %318 = math.tanh %317 : vector<2x32xf32>
    %319 = arith.mulf %314, %318 : vector<2x32xf32>
    %c0_65 = arith.constant 0 : index
    %c0_66 = arith.constant 0 : index
    %320 = vector.load %arg9[%c0_65, %c0_66] : memref<32x10xf32, #tpu.memory_space<vmem>>, vector<32x10xf32>
    %cst_67 = arith.constant dense<0.000000e+00> : vector<2x10xf32>
    %321 = tpu.matmul %319, %320, %cst_67 {dimension_numbers = #tpu.dot_dimension_numbers<[1], [0], [0], [1], [0, 0, 1, 1], [], []>} : vector<2x32xf32>, vector<32x10xf32>, vector<2x10xf32> -> vector<2x10xf32>
    %c0_68 = arith.constant 0 : index
    %c0_69 = arith.constant 0 : index
    %322 = vector.load %arg10[%c0_68, %c0_69] : memref<1x10xf32, #tpu.memory_space<vmem>>, vector<1x10xf32>
    %323 = vector.broadcast %322 : vector<1x10xf32> to vector<2x10xf32>
    %324 = arith.addf %321, %323 : vector<2x10xf32>
    %c0_70 = arith.constant 0 : index
    %c0_71 = arith.constant 0 : index
    %325 = vector.load %arg11[%c0_70, %c0_71] : memref<2x10xf32, #tpu.memory_space<vmem>>, vector<2x10xf32>
    tpu.vector_store %arg11[%c0_70, %c0_71], %324 {strides = array<i32>} : memref<2x10xf32, #tpu.memory_space<vmem>>, vector<2x10xf32>,
    return
  }
}

</mosaic_0001>

<bundles_post_ra>
// kernel: rnn_forward.1
= control target key start
LH: loop header
LB: loop body
LE: loop exit
PB: predicated region body
PF: predicated region fallthrough
CT: control target
= control target key end

     0   :  { %16 = vsyncpa [#allocation4], 0  ;;  %s3277_s0 = inlined_call_operand.vmem [shape: f32[16,16], index: 0, kind: input, shape index: {}]   ;;  %s3278_s1 = inlined_call_operand.vmem [shape: f32[1,16], index: 1, kind: input, shape index: {}]   ;;  %s3279_s2 = inlined_call_operand.vmem [shape: f32[1,16], index: 2, kind: input, shape index: {}]   ;;  %s3280_s3 = inlined_call_operand.hbm [shape: f32[16,128], index: 3, kind: input, shape index: {}]   ;;  %s3281_s4 = inlined_call_operand.vmem [shape: f32[32,128], index: 4, kind: input, shape index: {}]   ;;  %s3282_s5 = inlined_call_operand.hbm [shape: f32[1,128], index: 5, kind: input, shape index: {}]   ;;  %s3283_s6 = inlined_call_operand.vmem [shape: f32[32,128], index: 6, kind: input, shape index: {}]   ;;  %s3284_s7 = inlined_call_operand.vmem [shape: f32[32,128], index: 7, kind: input, shape index: {}]   ;;  %s3285_s8 = inlined_call_operand.hbm [shape: f32[1,128], index: 8, kind: input, shape index: {}]   ;;  %s3286_s9 = inlined_call_operand.vmem [shape: f32[32,10], index: 9, kind: input, shape index: {}]   ;;  %s3287_s10 = inlined_call_operand.hbm [shape: f32[1,10], index: 10, kind: input, shape index: {}]   ;;  %s3288_s11 = inlined_call_operand.hbm [shape: f32[2,10], index: 11, kind: output, shape index: {}]  }
   0x1   :  { %17 = vsyncpa [#allocation7], 0 }
   0x2   :  { %18 = vsyncpa [#allocation10], 0 }
   0x3   :  { %19 = vsyncpa [#allocation5], 0  ;;  %s2834_s17 = smov [#allocation6]   ;;  %s2835_s19 = smov [#allocation3]  }
   0x4   :  { %s46_s18 = sshll.u32 %s2834_s17, 4  ;;  %s31_s20 = sshll.u32 %s2835_s19, 4  ;;  %s47_s18 = int_to_ptr.vmem [resolvable:$true] %s46_s18  ;;  %s2906_s20 = int_to_ptr.vmem [resolvable:$true] %s31_s20 }
   0x5   :  { %s2716_s23 = scalar_lea.hbm %s3282_s5, 16 }
   0x6   :  { %p2717_p0 = scmp.ne.s32.totalorder %s3282_s5, %s2716_s23  ;;  %p2720_p1 = scmp.lt.u32.totalorder %s2716_s23, %s3282_s5 }
   0x8   :  { %p2722_p2 = pnand %p2720_p1, %p2717_p0 }
   0xa   :  { %2725 = shalt.err (!%p2722_p2)
}
   0xb   :  { %s2726_s28 = scalar_lea.vmem %s47_s18, 16  ;;  %s2730_s29 = scalar_lea.vmem %s47_s18, 32 }
   0xc   :  { %p2727_p3 = scmp.ne.s32.totalorder %s47_s18, %s2726_s28  ;;  %p2731_p4 = scmp.lt.s32.totalorder %s47_s18, %s47_s18 }
   0xd   :  { %p2732_p5 = scmp.lt.s32.totalorder %s2730_s29, %s2726_s28 }
   0xf   :  { %p2733_p6 = por %p2732_p5, %p2731_p4 }
  0x11   :  { %p2734_p7 = pnand %p2733_p6, %p2727_p3 }
  0x13   :  { %2737 = shalt.err (!%p2734_p7)
}
  0x14   :  { %49 = dma.hbm_to_vmem [thread:$0]  %s3282_s5, 16, %s47_s18, [#allocation7]  }
  0x15   :  { %s2738_s15 = scalar_lea.hbm %s3280_s3, 256 }
  0x16   :  { %p2739_p8 = scmp.ne.s32.totalorder %s3280_s3, %s2738_s15  ;;  %p2742_p9 = scmp.lt.u32.totalorder %s2738_s15, %s3280_s3 }
  0x18   :  { %p2744_p10 = pnand %p2742_p9, %p2739_p8 }
  0x1a   :  { %2747 = shalt.err (!%p2744_p10)
}
  0x1b   :  { %s2748_s22 = scalar_lea.vmem %s2906_s20, 256  ;;  %p2753_p12 = scmp.lt.s32.totalorder %s2906_s20, %s2906_s20 }
  0x1c   :  { %p2749_p11 = scmp.ne.s32.totalorder %s2906_s20, %s2748_s22  ;;  %p2754_p13 = scmp.lt.s32.totalorder %s2748_s22, %s2748_s22 }
  0x1e   :  { %p2755_p0 = por %p2754_p13, %p2753_p12 }
  0x20   :  { %p2756_p1 = pnand %p2755_p0, %p2749_p11 }
  0x22   :  { %2759 = shalt.err (!%p2756_p1)
}
  0x23   :  { %s2836_s5 = smov 128   ;;  %s2837_s18 = smov 8  }
  0x24   :  { %37 = dma.hbm_to_vmem [thread:$0]  %s3280_s3, 256, %s2906_s20, [#allocation4], %s2836_s5, %s2836_s5, %s2837_s18  }
  0x25   :  { %s2838_s25 = smov [#allocation8]   ;;  %s2839_s27 = smov [#allocation9]  }
  0x26   :  { %s60_s26 = sshll.u32 %s2838_s25, 4  ;;  %s72_s28 = sshll.u32 %s2839_s27, 4  ;;  %s61_s26 = int_to_ptr.vmem [resolvable:$true] %s60_s26  ;;  %s73_s28 = int_to_ptr.vmem [resolvable:$true] %s72_s28 }
  0x27   :  { %s2760_s12 = scalar_lea.hbm %s3285_s8, 16 }
  0x28   :  { %p2761_p2 = scmp.ne.s32.totalorder %s3285_s8, %s2760_s12  ;;  %p2764_p3 = scmp.lt.u32.totalorder %s2760_s12, %s3285_s8 }
  0x2a   :  { %p2766_p4 = pnand %p2764_p3, %p2761_p2 }
  0x2c   :  { %2769 = shalt.err (!%p2766_p4)
}
  0x2d   :  { %s2770_s3 = scalar_lea.vmem %s61_s26, 16  ;;  %s2774_s20 = scalar_lea.vmem %s61_s26, 32 }
  0x2e   :  { %p2771_p5 = scmp.ne.s32.totalorder %s61_s26, %s2770_s3  ;;  %p2775_p6 = scmp.lt.s32.totalorder %s61_s26, %s61_s26 }
  0x2f   :  { %p2776_p7 = scmp.lt.s32.totalorder %s2774_s20, %s2770_s3 }
  0x31   :  { %p2777_p8 = por %p2776_p7, %p2775_p6 }
  0x33   :  { %p2778_p9 = pnand %p2777_p8, %p2771_p5 }
  0x35   :  { %2781 = shalt.err (!%p2778_p9)
}
  0x36   :  { %63 = dma.hbm_to_vmem [thread:$0]  %s3285_s8, 16, %s61_s26, [#allocation7]  }
  0x37   :  { %s2782_s5 = scalar_lea.hbm %s3287_s10, 16 }
  0x38   :  { %p2783_p10 = scmp.ne.s32.totalorder %s3287_s10, %s2782_s5  ;;  %p2786_p11 = scmp.lt.u32.totalorder %s2782_s5, %s3287_s10 }
  0x3a   :  { %p2788_p12 = pnand %p2786_p11, %p2783_p10 }
  0x3c   :  { %2791 = shalt.err (!%p2788_p12)
}
  0x3d   :  { %s2792_s27 = scalar_lea.vmem %s73_s28, 16  ;;  %s2796_s29 = scalar_lea.vmem %s73_s28, 32 }
  0x3e   :  { %p2793_p13 = scmp.ne.s32.totalorder %s73_s28, %s2792_s27  ;;  %p2797_p0 = scmp.lt.s32.totalorder %s73_s28, %s73_s28 }
  0x3f   :  { %p2798_p1 = scmp.lt.s32.totalorder %s2796_s29, %s2792_s27 }
  0x41   :  { %p2799_p2 = por %p2798_p1, %p2797_p0 }
  0x43   :  { %p2800_p3 = pnand %p2799_p2, %p2793_p13 }
  0x45   :  { %2803 = shalt.err (!%p2800_p3)
}
  0x46   :  { %75 = dma.hbm_to_vmem [thread:$0]  %s3287_s10, 16, %s73_s28, [#allocation10]  }
  0x47   :  { %2826 = dma.done.wait [#allocation4], 256  }
  0x48   :  { %2827 = vsyncadd [#allocation4], 4294967040 }
  0x49   :  { %2828 = dma.done.wait [#allocation7], 32  }
  0x4a   :  { %2829 = vsyncadd [#allocation7], 4294967264 }
  0x4b   :  { %2830 = dma.done.wait [#allocation10], 16  }
  0x4c   :  { %2831 = vsyncadd [#allocation10], 4294967280  ;;  %v2840_v0 = vmov 0.0|0.0   ;;  %vm2841_vm0 = vmmov 0   ;;  %v2842_v1 = vmov 0.0   ;;  %v108_v2 = vld [vmem:[#allocation3] sm:$0xff] }
  0x4d   :  { %2466 = vmatprep.subr.bf16.mxu1 %v2840_v0  ;;  %2272 = vmatprep.mubr.msk.f32.mxu1 %vm2841_vm0, %v2842_v1  ;;  %v109_v3 = vld [vmem:[#allocation3 + $0x8] sm:$0xff]  ;;  %v199_v4 = vld [vmem:[%s3281_s4] sm:$0xff]  ;;  %v200_v6 = vld [vmem:[%s3281_s4 + $0x8] sm:$0xff]  ;;  %vm117_vm1 = vcmask 130048   ;;  %vm306_vm2 = vcmask 254976   ;;  %vm203_vm3 = vcmask 261120  }
  0x4e   :  { %v2462_v5 = vpack.c.bf16 %v109_v3, %v108_v2  ;;  %v88_v7 = vld [vmem:[%s3277_s0] sm:$0xff]  ;;  %v89_v8 = vld [vmem:[%s3277_s0 + $0x8] sm:$0xff]  ;;  %v2976_v9 = vpack.c.bf16 %v200_v6, %v199_v4  ;;  %v201_v12 = vld [vmem:[%s3281_s4 + $0x10] sm:$0xff]  ;;  %s2843_s0 = smov 64   ;;  %vm415_vm4 = vcmask 257026   ;;  %vm639_vm5 = vcmask 261126  }
  0x4f   :  { %v2122_v10 = vld [vmem:[%s3278_s1] ss:$0 sm:$0xff]  ;;  %v202_v15 = vld [vmem:[%s3281_s4 + $0x18] sm:$0xff]  ;;  %s2844_s1 = smov 32   ;;  %vm527_vm6 = vcmask 259076   ;;  %s2845_s22 = smov [#allocation11]  }
  0x50   :  { %v2123_v11 = vld [vmem:[%s3279_s2] ss:$0 sm:$0xff]  ;;  %2463 = vmatprep.subr.bf16.mxu0 %v2462_v5  ;;  %v97_v13 = vmul.f32 %v2122_v10, %v88_v7  ;;  %v98_v14 = vmul.f32 %v2122_v10, %v89_v8  ;;  %2468 = vmatpush3.bf16.msra.mxu1 %v2976_v9  ;;  %v2991_v16 = vpack.c.bf16 %v202_v15, %v201_v12  ;;  %s2111_s5 = sshll.u32 %s2845_s22, 4  ;;  %vm2103_vm7 = vcmask 74752   ;;  %s2112_s5 = int_to_ptr.vmem [resolvable:$true] %s2111_s5 }
  0x51   :  { %2465 = vmatpush3.bf16.msra.mxu0 %v2462_v5  ;;  %2469 = vmatprep.subr.bf16.mxu1 %v2840_v0  ;;  %v2124_v19 = vld [vmem:[#allocation6] ss:$0 sm:$0xff]  ;;  %p2809_p5 = scmp.lt.s32.totalorder %s2112_s5, %s2112_s5 }
  0x52   :  { %v106_v17 = vadd.f32 %v2123_v11, %v97_v13  ;;  %v107_v18 = vadd.f32 %v2123_v11, %v98_v14  ;;  %2472 = vmatprep.subr.bf16.mxu0 %v2840_v0 }
  0x54   :  { %2261 = vmatprep.mubr.msk.f32.mxu0 %vm117_vm1, %v106_v17  ;;  %2471 = vmatpush3.bf16.msra.mxu1 %v2991_v16 }
  0x55   :  { %2262 = vmatmul.mubr.msk.f32.vlgmr.msra.gmra.mrb[0].mxu0 %vm117_vm1, %v107_v18  ;;  %2478 = vmatprep.subr.bf16.mxu1 %v2840_v0 }
  0x56   :  { %2474 = vmatpush3.bf16.msra.mxu0 %v2976_v9  ;;  %2283 = vmatprep.mubr.msk.f32.mxu0 %vm2841_vm0, %v2842_v1 }
  0x57   :  { %2475 = vmatprep.subr.bf16.mxu0 %v2840_v0  ;;  %2273 = vmatmul.mubr.f32.vlgmr.msra.gmra.mrb[0].mxu1 %v2842_v1 }
  0x58   :  { %2480 = vmatpush3.bf16.msra.mxu1 %v2976_v9  ;;  %2294 = vmatprep.mubr.msk.f32.mxu1 %vm2841_vm0, %v2842_v1 }
  0x59   :  { %2481 = vmatprep.subr.bf16.mxu1 %v2840_v0 }
  0x5a   :  { %2477 = vmatpush3.bf16.msra.mxu0 %v2991_v16 }
  0x5b   :  { %2484 = vmatprep.subr.bf16.mxu0 %v2840_v0 }
  0x5c   :  { %2483 = vmatpush3.bf16.msra.mxu1 %v2991_v16 }
  0x5d   :  { %2490 = vmatprep.subr.bf16.mxu1 %v2840_v0 }
 0x128   :  { %v2263_v20 = vpop.f32.mrb[0].mxu0 }
 0x129   :  { %v3010_v21 = vadd.f32 %v2263_v20, %v2124_v19  ;;  %v190_v22 = vpop.f32.mrb[1].mxu0 }
 0x12a   :  { %v3012_v23 = vadd.f32 %v2124_v19, %v190_v22  ;;  %v273_v24 = vpop.f32.mrb[0].mxu1 }
 0x12b   :  { %v2274_v26 = vpop.f32.mrb[1].mxu1 }
 0x12c   :  { %v277_v25 = vadd.f32 %v273_v24, %v3012_v23 }
 0x12e   :  { %2588 = vtanh.f32 %v277_v25  ;;  %v2127_v28 = vmul.f32 -1.442695, %v277_v25 }
 0x130   :  { %2590 = vpow2.f32 %v2127_v28 }
 0x138   :  { %v2589_v27 = vpop.eup %2588 }
 0x139   :  { %287 = vrot.lane.b32.xlu0 %v2589_v27, %s2843_s0 }
 0x13a   :  { %v2591_v29 = vpop.eup %2590 }
 0x13b   :  { %v281_v30 = vadd.f32 1.0, %v2591_v29 }
 0x13d   :  { %2592 = vrcp.f32 %v281_v30 }
 0x147   :  { %v2593_v31 = vpop.eup %2592 }
 0x148   :  { %v285_v34 = vmul.f32 0.0, %v2593_v31 }
 0x1ab   :  { %v288_v32 = vpop.permute.xlu0 %287 }
 0x1ac   :  { %v290_v33 = vmul.f32 %v2593_v31, %v288_v32 }
 0x1ae   :  { %292 = vrot.lane.b32.xlu0 %v290_v33, %s2844_s1 }
 0x220   :  { %v293_v35 = vpop.permute.xlu0 %292 }
 0x221   :  { %v295_v36 = vadd.f32 %v293_v35, %v285_v34 }
 0x223   :  { %2594 = vtanh.f32 %v295_v36  ;;  %v392_v52 = vrot.slane %v295_v36, 6 }
 0x22d   :  { %v2595_v37 = vpop.eup %2594 }
 0x22e   :  { %298 = vrot.lane.b32.xlu1 %v2595_v37, %s2843_s0 }
 0x2a0   :  { %v299_v38 = vpop.permute.xlu1 %298 }
 0x2a1   :  { %v301_v39 = vmul.f32 %v2593_v31, %v299_v38 }
 0x2a3   :  { %303 = vrot.lane.b32.xlu1 %v301_v39, %s2844_s1 }
 0x315   :  { %v304_v40 = vpop.permute.xlu1 %303 }
 0x316   :  { %307 = vst.msk [vmem:[#allocation2] sm:$0x3] %vm306_vm2, %v304_v40  ;;  %2284 = vmatmul.mubr.msk.f32.vlgmr.msra.gmra.mrb[2].mxu0 %vm203_vm3, %v304_v40 }
 0x317   :  { %2486 = vmatpush3.bf16.msra.mxu0 %v2976_v9  ;;  %2305 = vmatprep.mubr.msk.f32.mxu0 %vm2841_vm0, %v2842_v1 }
 0x318   :  { %2487 = vmatprep.subr.bf16.mxu0 %v2840_v0 }
 0x31b   :  { %2489 = vmatpush3.bf16.msra.mxu0 %v2991_v16 }
 0x31c   :  { %2496 = vmatprep.subr.bf16.mxu0 %v2840_v0 }
 0x3e9   :  { %v376_v41 = vpop.f32.mrb[2].mxu0 }
 0x3ea   :  { %v381_v42 = vrot.slane %v376_v41, 6  ;;  %v2285_v43 = vpop.f32.mrb[3].mxu0 }
 0x3ec   :  { %v383_v44 = vadd.f32 %v381_v42, %v3012_v23 }
 0x3ee   :  { %2596 = vtanh.f32 %v383_v44  ;;  %v2129_v46 = vmul.f32 -1.442695, %v383_v44 }
 0x3f0   :  { %2598 = vpow2.f32 %v2129_v46 }
 0x3f8   :  { %v2597_v45 = vpop.eup %2596 }
 0x3f9   :  { %396 = vrot.lane.b32.xlu0 %v2597_v45, %s2843_s0 }
 0x3fa   :  { %v2599_v47 = vpop.eup %2598 }
 0x3fb   :  { %v387_v48 = vadd.f32 1.0, %v2599_v47 }
 0x3fd   :  { %2600 = vrcp.f32 %v387_v48 }
 0x407   :  { %v2601_v49 = vpop.eup %2600 }
 0x408   :  { %v394_v53 = vmul.f32 %v2601_v49, %v392_v52 }
 0x46b   :  { %v397_v50 = vpop.permute.xlu0 %396 }
 0x46c   :  { %v399_v51 = vmul.f32 %v2601_v49, %v397_v50 }
 0x46e   :  { %401 = vrot.lane.b32.xlu1 %v399_v51, %s2844_s1 }
 0x4e0   :  { %v402_v54 = vpop.permute.xlu1 %401 }
 0x4e1   :  { %v404_v55 = vadd.f32 %v402_v54, %v394_v53 }
 0x4e3   :  { %2602 = vtanh.f32 %v404_v55  ;;  %v504_v11 = vrot.slane %v404_v55, 6 }
 0x4ed   :  { %v2603_v56 = vpop.eup %2602 }
 0x4ee   :  { %407 = vrot.lane.b32.xlu0 %v2603_v56, %s2843_s0 }
 0x560   :  { %v408_v57 = vpop.permute.xlu0 %407 }
 0x561   :  { %v3031_v58 = vmul.f32 %v2601_v49, %v408_v57 }
 0x563   :  { %v417_v59 = vrot.slane %v3031_v58, 2 }
 0x565   :  { %418 = vrot.lane.b32.xlu1 %v417_v59, %s2844_s1 }
 0x5d7   :  { %v419_v60 = vpop.permute.xlu1 %418 }
 0x5d8   :  { %2295 = vmatmul.mubr.msk.f32.vlgmr.msra.gmra.mrb[2].mxu1 %vm203_vm3, %v419_v60 }
 0x5d9   :  { %2492 = vmatpush3.bf16.msra.mxu1 %v2976_v9  ;;  %2316 = vmatprep.mubr.msk.f32.mxu1 %vm2841_vm0, %v2842_v1 }
 0x5da   :  { %2493 = vmatprep.subr.bf16.mxu1 %v2840_v0 }
 0x5dd   :  { %2495 = vmatpush3.bf16.msra.mxu1 %v2991_v16 }
 0x5de   :  { %2502 = vmatprep.subr.bf16.mxu1 %v2840_v0 }
 0x6ab   :  { %v488_v61 = vpop.f32.mrb[2].mxu1 }
 0x6ac   :  { %v493_v62 = vrot.slane %v488_v61, 4  ;;  %v2296_v63 = vpop.f32.mrb[3].mxu1 }
 0x6ae   :  { %v495_v2 = vadd.f32 %v493_v62, %v3012_v23 }
 0x6b0   :  { %2604 = vtanh.f32 %v495_v2  ;;  %v2131_v4 = vmul.f32 -1.442695, %v495_v2 }
 0x6b2   :  { %2606 = vpow2.f32 %v2131_v4 }
 0x6ba   :  { %v2605_v3 = vpop.eup %2604 }
 0x6bb   :  { %508 = vrot.lane.b32.xlu0 %v2605_v3, %s2843_s0 }
 0x6bc   :  { %v2607_v5 = vpop.eup %2606 }
 0x6bd   :  { %v499_v6 = vadd.f32 1.0, %v2607_v5 }
 0x6bf   :  { %2608 = vrcp.f32 %v499_v6 }
 0x6c9   :  { %v2609_v7 = vpop.eup %2608 }
 0x6ca   :  { %v506_v12 = vmul.f32 %v2609_v7, %v504_v11 }
 0x72d   :  { %v509_v8 = vpop.permute.xlu0 %508 }
 0x72e   :  { %v511_v10 = vmul.f32 %v2609_v7, %v509_v8 }
 0x730   :  { %513 = vrot.lane.b32.xlu1 %v511_v10, %s2844_s1 }
 0x7a2   :  { %v514_v13 = vpop.permute.xlu1 %513 }
 0x7a3   :  { %v516_v14 = vadd.f32 %v514_v13, %v506_v12 }
 0x7a5   :  { %2610 = vtanh.f32 %v516_v14  ;;  %v616_v34 = vrot.slane %v516_v14, 6 }
 0x7af   :  { %v2611_v15 = vpop.eup %2610 }
 0x7b0   :  { %519 = vrot.lane.b32.xlu0 %v2611_v15, %s2843_s0 }
 0x822   :  { %v520_v17 = vpop.permute.xlu0 %519 }
 0x823   :  { %v3046_v18 = vmul.f32 %v2609_v7, %v520_v17 }
 0x825   :  { %v529_v19 = vrot.slane %v3046_v18, 4 }
 0x827   :  { %530 = vrot.lane.b32.xlu1 %v529_v19, %s2844_s1 }
 0x899   :  { %v531_v20 = vpop.permute.xlu1 %530 }
 0x89a   :  { %2306 = vmatmul.mubr.msk.f32.vlgmr.msra.gmra.mrb[4].mxu0 %vm203_vm3, %v531_v20 }
 0x89b   :  { %2498 = vmatpush3.bf16.msra.mxu0 %v2976_v9  ;;  %2327 = vmatprep.mubr.msk.f32.mxu0 %vm2841_vm0, %v2842_v1 }
 0x89c   :  { %2499 = vmatprep.subr.bf16.mxu0 %v2840_v0 }
 0x89f   :  { %2501 = vmatpush3.bf16.msra.mxu0 %v2991_v16 }
 0x8a0   :  { %2508 = vmatprep.subr.bf16.mxu0 %v2840_v0 }
 0x96d   :  { %v600_v22 = vpop.f32.mrb[4].mxu0 }
 0x96e   :  { %v605_v24 = vrot.slane %v600_v22, 2  ;;  %v2307_v25 = vpop.f32.mrb[5].mxu0 }
 0x970   :  { %v607_v26 = vadd.f32 %v605_v24, %v3012_v23 }
 0x972   :  { %2612 = vtanh.f32 %v607_v26  ;;  %v2133_v28 = vmul.f32 -1.442695, %v607_v26 }
 0x974   :  { %2614 = vpow2.f32 %v2133_v28 }
 0x97c   :  { %v2613_v27 = vpop.eup %2612 }
 0x97d   :  { %620 = vrot.lane.b32.xlu0 %v2613_v27, %s2843_s0 }
 0x97e   :  { %v2615_v29 = vpop.eup %2614 }
 0x97f   :  { %v611_v30 = vadd.f32 1.0, %v2615_v29 }
 0x981   :  { %2616 = vrcp.f32 %v611_v30 }
 0x98b   :  { %v2617_v31 = vpop.eup %2616 }
 0x98c   :  { %v618_v35 = vmul.f32 %v2617_v31, %v616_v34 }
 0x9ef   :  { %v621_v32 = vpop.permute.xlu0 %620 }
 0x9f0   :  { %v623_v33 = vmul.f32 %v2617_v31, %v621_v32 }
 0x9f2   :  { %625 = vrot.lane.b32.xlu1 %v623_v33, %s2844_s1 }
 0xa64   :  { %v626_v36 = vpop.permute.xlu1 %625 }
 0xa65   :  { %v628_v37 = vadd.f32 %v626_v36, %v618_v35 }
 0xa67   :  { %2618 = vtanh.f32 %v628_v37  ;;  %v725_v52 = vrot.slane %v628_v37, 6 }
 0xa71   :  { %v2619_v23 = vpop.eup %2618 }
 0xa72   :  { %631 = vrot.lane.b32.xlu0 %v2619_v23, %s2843_s0 }
 0xae4   :  { %v632_v38 = vpop.permute.xlu0 %631 }
 0xae5   :  { %v3061_v39 = vmul.f32 %v2617_v31, %v632_v38 }
 0xae7   :  { %v641_v40 = vrot.slane %v3061_v39, 6 }
 0xae9   :  { %642 = vrot.lane.b32.xlu1 %v641_v40, %s2844_s1 }
 0xb5b   :  { %v643_v41 = vpop.permute.xlu1 %642 }
 0xb5c   :  { %2317 = vmatmul.mubr.msk.f32.vlgmr.msra.gmra.mrb[4].mxu1 %vm203_vm3, %v643_v41 }
 0xb5d   :  { %2504 = vmatpush3.bf16.msra.mxu1 %v2976_v9  ;;  %2338 = vmatprep.mubr.msk.f32.mxu1 %vm2841_vm0, %v2842_v1 }
 0xb5e   :  { %2505 = vmatprep.subr.bf16.mxu1 %v2840_v0 }
 0xb61   :  { %2507 = vmatpush3.bf16.msra.mxu1 %v2991_v16 }
 0xc2f   :  { %v712_v42 = vpop.f32.mrb[4].mxu1 }
 0xc30   :  { %v716_v43 = vadd.f32 %v712_v42, %v3010_v21  ;;  %v2318_v44 = vpop.f32.mrb[5].mxu1 }
 0xc32   :  { %2620 = vtanh.f32 %v716_v43  ;;  %v2135_v46 = vmul.f32 -1.442695, %v716_v43 }
 0xc34   :  { %2622 = vpow2.f32 %v2135_v46 }
 0xc3c   :  { %v2621_v45 = vpop.eup %2620 }
 0xc3d   :  { %729 = vrot.lane.b32.xlu0 %v2621_v45, %s2843_s0 }
 0xc3e   :  { %v2623_v47 = vpop.eup %2622 }
 0xc3f   :  { %v720_v48 = vadd.f32 1.0, %v2623_v47 }
 0xc41   :  { %2624 = vrcp.f32 %v720_v48 }
 0xc4b   :  { %v2625_v49 = vpop.eup %2624 }
 0xc4c   :  { %v727_v53 = vmul.f32 %v2625_v49, %v725_v52 }
 0xcaf   :  { %v730_v50 = vpop.permute.xlu0 %729 }
 0xcb0   :  { %v732_v51 = vmul.f32 %v2625_v49, %v730_v50 }
 0xcb2   :  { %734 = vrot.lane.b32.xlu1 %v732_v51, %s2844_s1 }
 0xd24   :  { %v735_v54 = vpop.permute.xlu1 %734 }
 0xd25   :  { %v737_v55 = vadd.f32 %v735_v54, %v727_v53 }
 0xd27   :  { %2626 = vtanh.f32 %v737_v55 }
 0xd31   :  { %v2627_v56 = vpop.eup %2626 }
 0xd32   :  { %740 = vrot.lane.b32.xlu0 %v2627_v56, %s2843_s0 }
 0xda4   :  { %v741_v57 = vpop.permute.xlu0 %740 }
 0xda5   :  { %v743_v59 = vmul.f32 %v2625_v49, %v741_v57 }
 0xda7   :  { %745 = vrot.lane.b32.xlu1 %v743_v59, %s2844_s1 }
 0xe19   :  { %v746_v60 = vpop.permute.xlu1 %745 }
 0xe1a   :  { %748 = vst.msk [vmem:[#allocation2 + $0x8] sm:$0x3] %vm306_vm2, %v746_v60  ;;  %2328 = vmatmul.mubr.msk.f32.vlgmr.msra.gmra.mrb[6].mxu0 %vm203_vm3, %v746_v60  ;;  %v1082_v60 = vld [vmem:[%s3283_s6 + $0x8] sm:$0xff] }
 0xe1b   :  { %2510 = vmatpush3.bf16.msra.mxu0 %v2976_v9  ;;  %2349 = vmatprep.mubr.msk.f32.mxu0 %vm2841_vm0, %v2842_v1 }
 0xe1c   :  { %2511 = vmatprep.subr.bf16.mxu0 %v2840_v0 }
 0xe1f   :  { %2513 = vmatpush3.bf16.msra.mxu0 %v2991_v16  ;;  %v833_v16 = vrot.slane %v737_v55, 6 }
 0xe20   :  { %2522 = vmatprep.subr.bf16.mxu0 %v2840_v0 }
 0xeed   :  { %v817_v61 = vpop.f32.mrb[6].mxu0 }
 0xeee   :  { %v822_v62 = vrot.slane %v817_v61, 6  ;;  %v2329_v63 = vpop.f32.mrb[7].mxu0 }
 0xeef   :  { %v1083_v63 = vld [vmem:[%s3283_s6 + $0x10] sm:$0xff] }
 0xef0   :  { %v824_v2 = vadd.f32 %v822_v62, %v3010_v21  ;;  %v1173_v62 = vld [vmem:[%s3284_s7] sm:$0xff] }
 0xef2   :  { %2628 = vtanh.f32 %v824_v2  ;;  %v2137_v4 = vmul.f32 -1.442695, %v824_v2 }
 0xef4   :  { %2630 = vpow2.f32 %v2137_v4  ;;  %v1175_v4 = vld [vmem:[%s3284_s7 + $0x10] sm:$0xff] }
 0xefc   :  { %v2629_v3 = vpop.eup %2628 }
 0xefd   :  { %837 = vrot.lane.b32.xlu0 %v2629_v3, %s2843_s0  ;;  %v1084_v3 = vld [vmem:[%s3283_s6 + $0x18] sm:$0xff] }
 0xefe   :  { %v2631_v9 = vpop.eup %2630 }
 0xeff   :  { %v828_v5 = vadd.f32 1.0, %v2631_v9  ;;  %v1176_v9 = vld [vmem:[%s3284_s7 + $0x18] sm:$0xff] }
 0xf01   :  { %2632 = vrcp.f32 %v828_v5  ;;  %v2518_v5 = vpack.c.bf16 %v1084_v3, %v1083_v63 }
 0xf0b   :  { %v2633_v6 = vpop.eup %2632 }
 0xf0c   :  { %v835_v10 = vmul.f32 %v2633_v6, %v833_v16 }
 0xf6f   :  { %v838_v7 = vpop.permute.xlu0 %837 }
 0xf70   :  { %v840_v8 = vmul.f32 %v2633_v6, %v838_v7 }
 0xf72   :  { %842 = vrot.lane.b32.xlu1 %v840_v8, %s2844_s1 }
 0xfe4   :  { %v843_v11 = vpop.permute.xlu1 %842 }
 0xfe5   :  { %v845_v12 = vadd.f32 %v843_v11, %v835_v10 }
 0xfe7   :  { %2634 = vtanh.f32 %v845_v12  ;;  %v944_v33 = vrot.slane %v845_v12, 6 }
 0xff1   :  { %v2635_v13 = vpop.eup %2634 }
 0xff2   :  { %848 = vrot.lane.b32.xlu0 %v2635_v13, %s2843_s0 }
0x1064   :  { %v849_v14 = vpop.permute.xlu0 %848 }
0x1065   :  { %v3088_v15 = vmul.f32 %v2633_v6, %v849_v14  ;;  %v3144_v6 = vpack.c.bf16 %v1176_v9, %v1175_v4 }
0x1067   :  { %v857_v17 = vrot.slane %v3088_v15, 2 }
0x1069   :  { %858 = vrot.lane.b32.xlu1 %v857_v17, %s2844_s1  ;;  %v2142_v17 = vld [vmem:[#allocation8] ss:$0 sm:$0xff] }
0x10db   :  { %v859_v19 = vpop.permute.xlu1 %858 }
0x10dc   :  { %2339 = vmatmul.mubr.msk.f32.vlgmr.msra.gmra.mrb[6].mxu1 %vm203_vm3, %v859_v19 }
0x11af   :  { %v928_v20 = vpop.f32.mrb[6].mxu1 }
0x11b0   :  { %v933_v22 = vrot.slane %v928_v20, 4  ;;  %v2340_v24 = vpop.f32.mrb[7].mxu1 }
0x11b2   :  { %v935_v25 = vadd.f32 %v933_v22, %v3010_v21 }
0x11b4   :  { %2636 = vtanh.f32 %v935_v25  ;;  %v2139_v27 = vmul.f32 -1.442695, %v935_v25 }
0x11b6   :  { %2638 = vpow2.f32 %v2139_v27 }
0x11be   :  { %v2637_v26 = vpop.eup %2636 }
0x11bf   :  { %948 = vrot.lane.b32.xlu0 %v2637_v26, %s2843_s0 }
0x11c0   :  { %v2639_v28 = vpop.eup %2638 }
0x11c1   :  { %v939_v29 = vadd.f32 1.0, %v2639_v28 }
0x11c3   :  { %2640 = vrcp.f32 %v939_v29 }
0x11cd   :  { %v2641_v30 = vpop.eup %2640 }
0x11ce   :  { %v946_v34 = vmul.f32 %v2641_v30, %v944_v33 }
0x1231   :  { %v949_v31 = vpop.permute.xlu0 %948 }
0x1232   :  { %v951_v32 = vmul.f32 %v2641_v30, %v949_v31 }
0x1234   :  { %953 = vrot.lane.b32.xlu1 %v951_v32, %s2844_s1 }
0x12a6   :  { %v954_v35 = vpop.permute.xlu1 %953 }
0x12a7   :  { %v956_v36 = vadd.f32 %v954_v35, %v946_v34 }
0x12a9   :  { %2642 = vtanh.f32 %v956_v36 }
0x12b3   :  { %v2643_v37 = vpop.eup %2642 }
0x12b4   :  { %959 = vrot.lane.b32.xlu0 %v2643_v37, %s2843_s0 }
0x1326   :  { %v960_v23 = vpop.permute.xlu0 %959 }
0x1327   :  { %v962_v38 = vmul.f32 %v2641_v30, %v960_v23 }
0x1329   :  { %v968_v40 = vrot.slane %v962_v38, 4 }
0x132b   :  { %969 = vrot.lane.b32.xlu1 %v968_v40, %s2844_s1 }
0x139d   :  { %v970_v41 = vpop.permute.xlu1 %969 }
0x139e   :  { %2350 = vmatmul.mubr.msk.f32.vlgmr.msra.gmra.mrb[8].mxu0 %vm203_vm3, %v970_v41 }
0x139f   :  { %2371 = vmatprep.mubr.msk.f32.mxu0 %vm2841_vm0, %v2842_v1 }
0x1471   :  { %v1039_v42 = vpop.f32.mrb[8].mxu0 }
0x1472   :  { %v1044_v43 = vrot.slane %v1039_v42, 2  ;;  %v2351_v44 = vpop.f32.mrb[9].mxu0 }
0x1474   :  { %v1046_v45 = vadd.f32 %v1044_v43, %v3010_v21  ;;  %v1055_v21 = vrot.slane %v956_v36, 6 }
0x1476   :  { %2644 = vtanh.f32 %v1046_v45  ;;  %v2141_v47 = vmul.f32 -1.442695, %v1046_v45 }
0x1478   :  { %2646 = vpow2.f32 %v2141_v47 }
0x1480   :  { %v2645_v46 = vpop.eup %2644 }
0x1481   :  { %1059 = vrot.lane.b32.xlu0 %v2645_v46, %s2843_s0 }
0x1482   :  { %v2647_v48 = vpop.eup %2646 }
0x1483   :  { %v1050_v49 = vadd.f32 1.0, %v2647_v48 }
0x1485   :  { %2648 = vrcp.f32 %v1050_v49 }
0x148f   :  { %v2649_v50 = vpop.eup %2648 }
0x1490   :  { %v1057_v53 = vmul.f32 %v2649_v50, %v1055_v21 }
0x14f3   :  { %v1060_v51 = vpop.permute.xlu0 %1059 }
0x14f4   :  { %v1062_v52 = vmul.f32 %v2649_v50, %v1060_v51 }
0x14f6   :  { %1064 = vrot.lane.b32.xlu1 %v1062_v52, %s2844_s1 }
0x14fa   :  { %412 = vrot.lane.b32.xlu1 %v3031_v58, %s2844_s1 }
0x14fe   :  { %636 = vrot.lane.b32.xlu1 %v3061_v39, %s2844_s1  ;;  %v1081_v39 = vld [vmem:[%s3283_s6] sm:$0xff] }
0x14ff   :  { %v2514_v61 = vpack.c.bf16 %v1082_v60, %v1081_v39 }
0x1501   :  { %2515 = vmatprep.subr.bf16.mxu1 %v2514_v61 }
0x1502   :  { %964 = vrot.lane.b32.xlu1 %v962_v38, %s2844_s1  ;;  %2517 = vmatpush3.bf16.msra.mxu1 %v2514_v61 }
0x1503   :  { %2519 = vmatprep.subr.bf16.mxu1 %v2518_v5 }
0x1506   :  { %2521 = vmatpush3.bf16.msra.mxu1 %v2518_v5 }
0x1507   :  { %2528 = vmatprep.subr.bf16.mxu1 %v2840_v0 }
0x1568   :  { %v1065_v54 = vpop.permute.xlu1 %1064 }
0x1569   :  { %v1067_v55 = vadd.f32 %v1065_v54, %v1057_v53 }
0x156b   :  { %2650 = vtanh.f32 %v1067_v55 }
0x156c   :  { %v413_v56 = vpop.permute.xlu1 %412 }
0x156d   :  { %416 = vst.msk [vmem:[#allocation2] sm:$0xc] %vm415_vm4, %v413_v56 }
0x1570   :  { %v637_v57 = vpop.permute.xlu1 %636 }
0x1571   :  { %640 = vst.msk [vmem:[#allocation2] sm:$0xc0] %vm639_vm5, %v637_v57 }
0x1574   :  { %v965_v58 = vpop.permute.xlu1 %964 }
0x1575   :  { %v2651_v59 = vpop.eup %2650  ;;  %967 = vst.msk [vmem:[#allocation2 + $0x8] sm:$0x30] %vm527_vm6, %v965_v58 }
0x1576   :  { %1070 = vrot.lane.b32.xlu0 %v2651_v59, %s2843_s0 }
0x157a   :  { %524 = vrot.lane.b32.xlu0 %v3046_v18, %s2844_s1  ;;  %v1174_v18 = vld [vmem:[%s3284_s7 + $0x8] sm:$0xff] }
0x157b   :  { %v3132_v2 = vpack.c.bf16 %v1174_v18, %v1173_v62 }
0x157d   :  { %2524 = vmatpush3.bf16.msra.mxu0 %v3132_v2 }
0x157e   :  { %853 = vrot.lane.b32.xlu0 %v3088_v15, %s2844_s1  ;;  %2525 = vmatprep.subr.bf16.mxu0 %v2840_v0 }
0x1581   :  { %2527 = vmatpush3.bf16.msra.mxu0 %v3144_v6 }
0x1582   :  { %2534 = vmatprep.subr.bf16.mxu0 %v2840_v0 }
0x1584   :  { %2372 = vmatmul.mubr.f32.vlgmr.msra.gmra.mrb[10].mxu0 %v2842_v1 }
0x1585   :  { %2536 = vmatpush3.bf16.msra.mxu0 %v3132_v2  ;;  %2393 = vmatprep.mubr.msk.f32.mxu0 %vm2841_vm0, %v2842_v1 }
0x1586   :  { %2537 = vmatprep.subr.bf16.mxu0 %v2840_v0 }
0x1589   :  { %2539 = vmatpush3.bf16.msra.mxu0 %v3144_v6 }
0x158a   :  { %2546 = vmatprep.subr.bf16.mxu0 %v2840_v0 }
0x15e8   :  { %v1071_v7 = vpop.permute.xlu0 %1070 }
0x15e9   :  { %v1073_v8 = vmul.f32 %v2649_v50, %v1071_v7 }
0x15eb   :  { %1075 = vrot.lane.b32.xlu0 %v1073_v8, %s2844_s1 }
0x15ec   :  { %v525_v16 = vpop.permute.xlu0 %524 }
0x15ed   :  { %528 = vst.msk [vmem:[#allocation2] sm:$0x30] %vm527_vm6, %v525_v16 }
0x15f0   :  { %v854_v10 = vpop.permute.xlu0 %853 }
0x15f1   :  { %856 = vst.msk [vmem:[#allocation2 + $0x8] sm:$0xc] %vm415_vm4, %v854_v10 }
0x15f4   :  { %v1079_v11 = vld [vmem:[#allocation2] sm:$0xff] }
0x15f5   :  { %2360 = vmatprep.mubr.msk.f32.mxu1 %vm203_vm3, %v1079_v11 }
0x1657   :  { %v1243_v14 = vpop.f32.mrb[10].mxu0 }
0x1658   :  { %v2373_v15 = vpop.f32.mrb[11].mxu0 }
0x165d   :  { %v1076_v12 = vpop.permute.xlu0 %1075 }
0x165e   :  { %1078 = vst.msk [vmem:[#allocation2 + $0x8] sm:$0xc0] %vm639_vm5, %v1076_v12 }
0x1665   :  { %v1080_v13 = vld [vmem:[#allocation2 + $0x8] sm:$0xff] }
0x1666   :  { %2361 = vmatmul.mubr.msk.f32.vlgmr.msra.gmra.mrb[8].mxu1 %vm203_vm3, %v1080_v13 }
0x1667   :  { %2530 = vmatpush3.bf16.msra.mxu1 %v3132_v2  ;;  %2382 = vmatprep.mubr.msk.f32.mxu1 %vm2841_vm0, %v2842_v1 }
0x1668   :  { %2531 = vmatprep.subr.bf16.mxu1 %v2840_v0 }
0x166b   :  { %2533 = vmatpush3.bf16.msra.mxu1 %v3144_v6 }
0x166c   :  { %2540 = vmatprep.subr.bf16.mxu1 %v2840_v0 }
0x1739   :  { %v2362_v19 = vpop.f32.mrb[8].mxu1 }
0x173a   :  { %v3169_v20 = vadd.f32 %v2362_v19, %v2142_v17  ;;  %v1164_v22 = vpop.f32.mrb[9].mxu1 }
0x173b   :  { %v3171_v24 = vadd.f32 %v2142_v17, %v1164_v22 }
0x173d   :  { %v1247_v25 = vadd.f32 %v1243_v14, %v3171_v24 }
0x173f   :  { %2652 = vtanh.f32 %v1247_v25  ;;  %v2145_v27 = vmul.f32 -1.442695, %v1247_v25 }
0x1741   :  { %2654 = vpow2.f32 %v2145_v27 }
0x1749   :  { %v2653_v26 = vpop.eup %2652 }
0x174a   :  { %1257 = vrot.lane.b32.xlu1 %v2653_v26, %s2843_s0 }
0x174b   :  { %v2655_v28 = vpop.eup %2654 }
0x174c   :  { %v1251_v29 = vadd.f32 1.0, %v2655_v28 }
0x174e   :  { %2656 = vrcp.f32 %v1251_v29 }
0x1758   :  { %v2657_v30 = vpop.eup %2656 }
0x1759   :  { %v1255_v33 = vmul.f32 0.0, %v2657_v30 }
0x17bc   :  { %v1258_v31 = vpop.permute.xlu1 %1257 }
0x17bd   :  { %v1260_v32 = vmul.f32 %v2657_v30, %v1258_v31 }
0x17bf   :  { %1262 = vrot.lane.b32.xlu0 %v1260_v32, %s2844_s1 }
0x1831   :  { %v1263_v34 = vpop.permute.xlu0 %1262 }
0x1832   :  { %v1265_v35 = vadd.f32 %v1263_v34, %v1255_v33 }
0x1834   :  { %2658 = vtanh.f32 %v1265_v35  ;;  %v1359_v51 = vrot.slane %v1265_v35, 6 }
0x183e   :  { %v2659_v36 = vpop.eup %2658 }
0x183f   :  { %1268 = vrot.lane.b32.xlu1 %v2659_v36, %s2843_s0 }
0x18b1   :  { %v1269_v37 = vpop.permute.xlu1 %1268 }
0x18b2   :  { %v1271_v23 = vmul.f32 %v2657_v30, %v1269_v37 }
0x18b4   :  { %1273 = vrot.lane.b32.xlu0 %v1271_v23, %s2844_s1 }
0x1926   :  { %v1274_v38 = vpop.permute.xlu0 %1273 }
0x1927   :  { %2383 = vmatmul.mubr.msk.f32.vlgmr.msra.gmra.mrb[10].mxu1 %vm203_vm3, %v1274_v38 }
0x1928   :  { %2542 = vmatpush3.bf16.msra.mxu1 %v3132_v2  ;;  %2404 = vmatprep.mubr.msk.f32.mxu1 %vm2841_vm0, %v2842_v1 }
0x1929   :  { %2543 = vmatprep.subr.bf16.mxu1 %v2840_v0 }
0x192c   :  { %2545 = vmatpush3.bf16.msra.mxu1 %v3144_v6 }
0x192d   :  { %2552 = vmatprep.subr.bf16.mxu1 %v2840_v0 }
0x19fa   :  { %v1343_v40 = vpop.f32.mrb[10].mxu1 }
0x19fb   :  { %v1348_v41 = vrot.slane %v1343_v40, 6  ;;  %v2384_v42 = vpop.f32.mrb[11].mxu1 }
0x19fd   :  { %v1350_v43 = vadd.f32 %v1348_v41, %v3171_v24 }
0x19ff   :  { %2660 = vtanh.f32 %v1350_v43  ;;  %v2147_v45 = vmul.f32 -1.442695, %v1350_v43 }
0x1a01   :  { %2662 = vpow2.f32 %v2147_v45 }
0x1a09   :  { %v2661_v44 = vpop.eup %2660 }
0x1a0a   :  { %1363 = vrot.lane.b32.xlu1 %v2661_v44, %s2843_s0 }
0x1a0b   :  { %v2663_v46 = vpop.eup %2662 }
0x1a0c   :  { %v1354_v47 = vadd.f32 1.0, %v2663_v46 }
0x1a0e   :  { %2664 = vrcp.f32 %v1354_v47 }
0x1a18   :  { %v2665_v48 = vpop.eup %2664 }
0x1a19   :  { %v1361_v52 = vmul.f32 %v2665_v48, %v1359_v51 }
0x1a7c   :  { %v1364_v49 = vpop.permute.xlu1 %1363 }
0x1a7d   :  { %v1366_v50 = vmul.f32 %v2665_v48, %v1364_v49 }
0x1a7f   :  { %1368 = vrot.lane.b32.xlu0 %v1366_v50, %s2844_s1 }
0x1af1   :  { %v1369_v21 = vpop.permute.xlu0 %1368 }
0x1af2   :  { %v1371_v53 = vadd.f32 %v1369_v21, %v1361_v52 }
0x1af4   :  { %2666 = vtanh.f32 %v1371_v53  ;;  %v1466_v7 = vrot.slane %v1371_v53, 6 }
0x1afe   :  { %v2667_v54 = vpop.eup %2666 }
0x1aff   :  { %1374 = vrot.lane.b32.xlu1 %v2667_v54, %s2843_s0 }
0x1b71   :  { %v1375_v55 = vpop.permute.xlu1 %1374 }
0x1b72   :  { %v1377_v56 = vmul.f32 %v2665_v48, %v1375_v55 }
0x1b74   :  { %v1379_v57 = vrot.slane %v1377_v56, 2 }
0x1b76   :  { %1380 = vrot.lane.b32.xlu0 %v1379_v57, %s2844_s1 }
0x1be8   :  { %v1381_v58 = vpop.permute.xlu0 %1380 }
0x1be9   :  { %2394 = vmatmul.mubr.msk.f32.vlgmr.msra.gmra.mrb[12].mxu0 %vm203_vm3, %v1381_v58 }
0x1bea   :  { %2548 = vmatpush3.bf16.msra.mxu0 %v3132_v2  ;;  %2415 = vmatprep.mubr.msk.f32.mxu0 %vm2841_vm0, %v2842_v1 }
0x1beb   :  { %2549 = vmatprep.subr.bf16.mxu0 %v2840_v0 }
0x1bee   :  { %2551 = vmatpush3.bf16.msra.mxu0 %v3144_v6 }
0x1bef   :  { %2558 = vmatprep.subr.bf16.mxu0 %v2840_v0 }
0x1cbc   :  { %v1450_v59 = vpop.f32.mrb[12].mxu0 }
0x1cbd   :  { %v1455_v39 = vrot.slane %v1450_v59, 4  ;;  %v2395_v60 = vpop.f32.mrb[13].mxu0 }
0x1cbf   :  { %v1457_v61 = vadd.f32 %v1455_v39, %v3171_v24 }
0x1cc1   :  { %2668 = vtanh.f32 %v1457_v61  ;;  %v2149_v18 = vmul.f32 -1.442695, %v1457_v61 }
0x1cc3   :  { %2670 = vpow2.f32 %v2149_v18 }
0x1ccb   :  { %v2669_v62 = vpop.eup %2668 }
0x1ccc   :  { %1470 = vrot.lane.b32.xlu1 %v2669_v62, %s2843_s0 }
0x1ccd   :  { %v2671_v63 = vpop.eup %2670 }
0x1cce   :  { %v1461_v3 = vadd.f32 1.0, %v2671_v63 }
0x1cd0   :  { %2672 = vrcp.f32 %v1461_v3 }
0x1cda   :  { %v2673_v4 = vpop.eup %2672 }
0x1cdb   :  { %v1468_v8 = vmul.f32 %v2673_v4, %v1466_v7 }
0x1d3e   :  { %v1471_v9 = vpop.permute.xlu1 %1470 }
0x1d3f   :  { %v1473_v5 = vmul.f32 %v2673_v4, %v1471_v9 }
0x1d41   :  { %1475 = vrot.lane.b32.xlu0 %v1473_v5, %s2844_s1 }
0x1db3   :  { %v1476_v16 = vpop.permute.xlu0 %1475 }
0x1db4   :  { %v1478_v10 = vadd.f32 %v1476_v16, %v1468_v8 }
0x1db6   :  { %2674 = vtanh.f32 %v1478_v10  ;;  %v1573_v33 = vrot.slane %v1478_v10, 6 }
0x1dc0   :  { %v2675_v11 = vpop.eup %2674 }
0x1dc1   :  { %1481 = vrot.lane.b32.xlu1 %v2675_v11, %s2843_s0 }
0x1e33   :  { %v1482_v12 = vpop.permute.xlu1 %1481 }
0x1e34   :  { %v1484_v13 = vmul.f32 %v2673_v4, %v1482_v12 }
0x1e36   :  { %v1486_v14 = vrot.slane %v1484_v13, 4 }
0x1e38   :  { %1487 = vrot.lane.b32.xlu0 %v1486_v14, %s2844_s1 }
0x1eaa   :  { %v1488_v15 = vpop.permute.xlu0 %1487 }
0x1eab   :  { %2405 = vmatmul.mubr.msk.f32.vlgmr.msra.gmra.mrb[12].mxu1 %vm203_vm3, %v1488_v15 }
0x1eac   :  { %2554 = vmatpush3.bf16.msra.mxu1 %v3132_v2  ;;  %2426 = vmatprep.mubr.msk.f32.mxu1 %vm2841_vm0, %v2842_v1 }
0x1ead   :  { %2555 = vmatprep.subr.bf16.mxu1 %v2840_v0 }
0x1eb0   :  { %2557 = vmatpush3.bf16.msra.mxu1 %v3144_v6 }
0x1eb1   :  { %2564 = vmatprep.subr.bf16.mxu1 %v2840_v0 }
0x1f7e   :  { %v1557_v17 = vpop.f32.mrb[12].mxu1 }
0x1f7f   :  { %v1562_v19 = vrot.slane %v1557_v17, 2  ;;  %v2406_v22 = vpop.f32.mrb[13].mxu1 }
0x1f81   :  { %v1564_v25 = vadd.f32 %v1562_v19, %v3171_v24 }
0x1f83   :  { %2676 = vtanh.f32 %v1564_v25  ;;  %v2151_v27 = vmul.f32 -1.442695, %v1564_v25 }
0x1f85   :  { %2678 = vpow2.f32 %v2151_v27 }
0x1f8d   :  { %v2677_v26 = vpop.eup %2676 }
0x1f8e   :  { %1577 = vrot.lane.b32.xlu1 %v2677_v26, %s2843_s0 }
0x1f8f   :  { %v2679_v28 = vpop.eup %2678 }
0x1f90   :  { %v1568_v29 = vadd.f32 1.0, %v2679_v28 }
0x1f92   :  { %2680 = vrcp.f32 %v1568_v29 }
0x1f9c   :  { %v2681_v30 = vpop.eup %2680 }
0x1f9d   :  { %v1575_v34 = vmul.f32 %v2681_v30, %v1573_v33 }
0x2000   :  { %v1578_v31 = vpop.permute.xlu1 %1577 }
0x2001   :  { %v1580_v32 = vmul.f32 %v2681_v30, %v1578_v31 }
0x2003   :  { %1582 = vrot.lane.b32.xlu0 %v1580_v32, %s2844_s1 }
0x2075   :  { %v1583_v35 = vpop.permute.xlu0 %1582 }
0x2076   :  { %v1585_v36 = vadd.f32 %v1583_v35, %v1575_v34 }
0x2078   :  { %2682 = vtanh.f32 %v1585_v36  ;;  %v1677_v51 = vrot.slane %v1585_v36, 6 }
0x2082   :  { %v2683_v24 = vpop.eup %2682 }
0x2083   :  { %1588 = vrot.lane.b32.xlu1 %v2683_v24, %s2843_s0 }
0x20f5   :  { %v1589_v37 = vpop.permute.xlu1 %1588 }
0x20f6   :  { %v1591_v23 = vmul.f32 %v2681_v30, %v1589_v37 }
0x20f8   :  { %v1593_v38 = vrot.slane %v1591_v23, 6 }
0x20fa   :  { %1594 = vrot.lane.b32.xlu0 %v1593_v38, %s2844_s1 }
0x216c   :  { %v1595_v40 = vpop.permute.xlu0 %1594 }
0x216d   :  { %2416 = vmatmul.mubr.msk.f32.vlgmr.msra.gmra.mrb[14].mxu0 %vm203_vm3, %v1595_v40 }
0x216e   :  { %2560 = vmatpush3.bf16.msra.mxu0 %v3132_v2  ;;  %2437 = vmatprep.mubr.msk.f32.mxu0 %vm2841_vm0, %v2842_v1 }
0x216f   :  { %2561 = vmatprep.subr.bf16.mxu0 %v2840_v0 }
0x2172   :  { %2563 = vmatpush3.bf16.msra.mxu0 %v3144_v6 }
0x2173   :  { %2570 = vmatprep.subr.bf16.mxu0 %v2840_v0 }
0x2240   :  { %v1664_v41 = vpop.f32.mrb[14].mxu0 }
0x2241   :  { %v1668_v42 = vadd.f32 %v1664_v41, %v3169_v20  ;;  %v2417_v43 = vpop.f32.mrb[15].mxu0 }
0x2243   :  { %2684 = vtanh.f32 %v1668_v42  ;;  %v2153_v45 = vmul.f32 -1.442695, %v1668_v42 }
0x2245   :  { %2686 = vpow2.f32 %v2153_v45 }
0x224d   :  { %v2685_v44 = vpop.eup %2684 }
0x224e   :  { %1681 = vrot.lane.b32.xlu1 %v2685_v44, %s2843_s0 }
0x224f   :  { %v2687_v46 = vpop.eup %2686 }
0x2250   :  { %v1672_v47 = vadd.f32 1.0, %v2687_v46 }
0x2252   :  { %2688 = vrcp.f32 %v1672_v47 }
0x225c   :  { %v2689_v48 = vpop.eup %2688 }
0x225d   :  { %v1679_v52 = vmul.f32 %v2689_v48, %v1677_v51 }
0x22c0   :  { %v1682_v49 = vpop.permute.xlu1 %1681 }
0x22c1   :  { %v1684_v50 = vmul.f32 %v2689_v48, %v1682_v49 }
0x22c3   :  { %1686 = vrot.lane.b32.xlu0 %v1684_v50, %s2844_s1 }
0x2335   :  { %v1687_v21 = vpop.permute.xlu0 %1686 }
0x2336   :  { %v1689_v53 = vadd.f32 %v1687_v21, %v1679_v52  ;;  %v2017_v52 = vld [vmem:[%s3286_s9 + $0x8] sm:$0xff]  ;;  %v2018_v21 = vld [vmem:[%s3286_s9 + $0x10] sm:$0xff] }
0x2338   :  { %2690 = vtanh.f32 %v1689_v53 }
0x2342   :  { %v2691_v54 = vpop.eup %2690 }
0x2343   :  { %1692 = vrot.lane.b32.xlu1 %v2691_v54, %s2843_s0  ;;  %v2019_v54 = vld [vmem:[%s3286_s9 + $0x18] sm:$0xff] }
0x23b5   :  { %v1693_v55 = vpop.permute.xlu1 %1692 }
0x23b6   :  { %v1695_v56 = vmul.f32 %v2689_v48, %v1693_v55  ;;  %v2574_v55 = vpack.c.bf16 %v2019_v54, %v2018_v21 }
0x23b8   :  { %1697 = vrot.lane.b32.xlu0 %v1695_v56, %s2844_s1 }
0x242a   :  { %v1698_v57 = vpop.permute.xlu0 %1697 }
0x242b   :  { %2427 = vmatmul.mubr.msk.f32.vlgmr.msra.gmra.mrb[14].mxu1 %vm203_vm3, %v1698_v57 }
0x242c   :  { %2566 = vmatpush3.bf16.msra.mxu1 %v3132_v2  ;;  %2448 = vmatprep.mubr.msk.f32.mxu1 %vm2841_vm0, %v2842_v1 }
0x242d   :  { %2567 = vmatprep.subr.bf16.mxu1 %v2840_v0 }
0x2430   :  { %2569 = vmatpush3.bf16.msra.mxu1 %v3144_v6  ;;  %v1783_v6 = vrot.slane %v1689_v53, 6 }
0x24fe   :  { %v1767_v58 = vpop.f32.mrb[14].mxu1 }
0x24ff   :  { %v1772_v59 = vrot.slane %v1767_v58, 6  ;;  %v2428_v39 = vpop.f32.mrb[15].mxu1 }
0x2501   :  { %v1774_v60 = vadd.f32 %v1772_v59, %v3169_v20 }
0x2503   :  { %2692 = vtanh.f32 %v1774_v60  ;;  %v2155_v62 = vmul.f32 -1.442695, %v1774_v60  ;;  %v2160_v60 = vld [vmem:[#allocation9] ss:$0 sm:$0xff] }
0x2505   :  { %2694 = vpow2.f32 %v2155_v62 }
0x250d   :  { %v2693_v61 = vpop.eup %2692 }
0x250e   :  { %1787 = vrot.lane.b32.xlu1 %v2693_v61, %s2843_s0 }
0x250f   :  { %v2695_v18 = vpop.eup %2694 }
0x2510   :  { %v1778_v2 = vadd.f32 1.0, %v2695_v18 }
0x2512   :  { %2696 = vrcp.f32 %v1778_v2 }
0x251c   :  { %v2697_v63 = vpop.eup %2696 }
0x251d   :  { %v1785_v9 = vmul.f32 %v2697_v63, %v1783_v6 }
0x2580   :  { %v1788_v3 = vpop.permute.xlu1 %1787 }
0x2581   :  { %v1790_v4 = vmul.f32 %v2697_v63, %v1788_v3 }
0x2583   :  { %1792 = vrot.lane.b32.xlu0 %v1790_v4, %s2844_s1 }
0x25f5   :  { %v1793_v5 = vpop.permute.xlu0 %1792 }
0x25f6   :  { %v1795_v7 = vadd.f32 %v1793_v5, %v1785_v9 }
0x25f8   :  { %2698 = vtanh.f32 %v1795_v7 }
0x2602   :  { %v2699_v8 = vpop.eup %2698 }
0x2603   :  { %1798 = vrot.lane.b32.xlu1 %v2699_v8, %s2843_s0 }
0x2675   :  { %v1799_v16 = vpop.permute.xlu1 %1798 }
0x2676   :  { %v1801_v10 = vmul.f32 %v2697_v63, %v1799_v16 }
0x2678   :  { %v1803_v11 = vrot.slane %v1801_v10, 2 }
0x267a   :  { %1804 = vrot.lane.b32.xlu0 %v1803_v11, %s2844_s1 }
0x26ec   :  { %v1805_v12 = vpop.permute.xlu0 %1804 }
0x26ed   :  { %2438 = vmatmul.mubr.msk.f32.vlgmr.msra.gmra.mrb[16].mxu0 %vm203_vm3, %v1805_v12 }
0x26ee   :  { %2459 = vmatprep.mubr.msk.f32.mxu0 %vm2841_vm0, %v2842_v1  ;;  %v1890_v1 = vrot.slane %v1795_v7, 6 }
0x27c0   :  { %v1874_v13 = vpop.f32.mrb[16].mxu0 }
0x27c1   :  { %v1879_v14 = vrot.slane %v1874_v13, 4  ;;  %v2439_v15 = vpop.f32.mrb[17].mxu0 }
0x27c3   :  { %v1881_v17 = vadd.f32 %v1879_v14, %v3169_v20 }
0x27c5   :  { %2700 = vtanh.f32 %v1881_v17  ;;  %v2157_v22 = vmul.f32 -1.442695, %v1881_v17 }
0x27c7   :  { %2702 = vpow2.f32 %v2157_v22 }
0x27cf   :  { %v2701_v19 = vpop.eup %2700 }
0x27d0   :  { %1894 = vrot.lane.b32.xlu1 %v2701_v19, %s2843_s0 }
0x27d1   :  { %v2703_v25 = vpop.eup %2702 }
0x27d2   :  { %v1885_v26 = vadd.f32 1.0, %v2703_v25 }
0x27d4   :  { %2704 = vrcp.f32 %v1885_v26 }
0x27de   :  { %v2705_v27 = vpop.eup %2704 }
0x27df   :  { %v1892_v30 = vmul.f32 %v2705_v27, %v1890_v1 }
0x2842   :  { %v1895_v28 = vpop.permute.xlu1 %1894 }
0x2843   :  { %v1897_v29 = vmul.f32 %v2705_v27, %v1895_v28 }
0x2845   :  { %1899 = vrot.lane.b32.xlu0 %v1897_v29, %s2844_s1 }
0x28b7   :  { %v1900_v31 = vpop.permute.xlu0 %1899 }
0x28b8   :  { %v1902_v32 = vadd.f32 %v1900_v31, %v1892_v30 }
0x28ba   :  { %2706 = vtanh.f32 %v1902_v32  ;;  %v1997_v48 = vrot.slane %v1902_v32, 6 }
0x28c4   :  { %v2707_v33 = vpop.eup %2706 }
0x28c5   :  { %1905 = vrot.lane.b32.xlu1 %v2707_v33, %s2843_s0 }
0x2937   :  { %v1906_v34 = vpop.permute.xlu1 %1905 }
0x2938   :  { %v1908_v35 = vmul.f32 %v2705_v27, %v1906_v34 }
0x293a   :  { %v1910_v36 = vrot.slane %v1908_v35, 4 }
0x293c   :  { %1911 = vrot.lane.b32.xlu0 %v1910_v36, %s2844_s1 }
0x29ae   :  { %v1912_v24 = vpop.permute.xlu0 %1911 }
0x29af   :  { %2449 = vmatmul.mubr.msk.f32.vlgmr.msra.gmra.mrb[16].mxu1 %vm203_vm3, %v1912_v24 }
0x2a82   :  { %v1981_v37 = vpop.f32.mrb[16].mxu1 }
0x2a83   :  { %v1986_v23 = vrot.slane %v1981_v37, 2  ;;  %v2450_v38 = vpop.f32.mrb[17].mxu1 }
0x2a85   :  { %v1988_v40 = vadd.f32 %v1986_v23, %v3169_v20  ;;  %v2016_v20 = vld [vmem:[%s3286_s9] sm:$0xff]  ;;  %s2804_s9 = scalar_lea.vmem %s2112_s5, 32 }
0x2a86   :  { %v2571_v53 = vpack.c.bf16 %v2017_v52, %v2016_v20  ;;  %p2805_p4 = scmp.ne.s32.totalorder %s2112_s5, %s2804_s9  ;;  %p2810_p6 = scmp.lt.s32.totalorder %s2804_s9, %s2804_s9 }
0x2a87   :  { %2708 = vtanh.f32 %v1988_v40  ;;  %v2159_v42 = vmul.f32 -1.442695, %v1988_v40 }
0x2a88   :  { %2572 = vmatpush3.bf16.msra.mxu0 %v2571_v53  ;;  %p2811_p7 = por %p2810_p6, %p2809_p5 }
0x2a89   :  { %2710 = vpow2.f32 %v2159_v42  ;;  %2573 = vmatprep.subr.bf16.mxu0 %v2840_v0 }
0x2a8a   :  { %p2812_p8 = pnand %p2811_p7, %p2805_p4 }
0x2a8c   :  { %2575 = vmatpush3.bf16.msra.mxu0 %v2574_v55 }
0x2a91   :  { %v2709_v41 = vpop.eup %2708 }
0x2a92   :  { %2001 = vrot.lane.b32.xlu1 %v2709_v41, %s2843_s0 }
0x2a93   :  { %v2711_v43 = vpop.eup %2710 }
0x2a94   :  { %v1992_v44 = vadd.f32 1.0, %v2711_v43 }
0x2a96   :  { %2712 = vrcp.f32 %v1992_v44 }
0x2aa0   :  { %v2713_v45 = vpop.eup %2712 }
0x2aa1   :  { %v1999_v49 = vmul.f32 %v2713_v45, %v1997_v48 }
0x2b04   :  { %v2002_v46 = vpop.permute.xlu1 %2001 }
0x2b05   :  { %v2004_v47 = vmul.f32 %v2713_v45, %v2002_v46 }
0x2b07   :  { %2006 = vrot.lane.b32.xlu0 %v2004_v47, %s2844_s1 }
0x2b79   :  { %v2007_v50 = vpop.permute.xlu0 %2006 }
0x2b7a   :  { %v2009_v51 = vadd.f32 %v2007_v50, %v1999_v49 }
0x2b7c   :  { %2714 = vtanh.f32 %v2009_v51 }
0x2b86   :  { %v2715_v56 = vpop.eup %2714 }
0x2b87   :  { %2012 = vrot.lane.b32.xlu1 %v2715_v56, %s2843_s0 }
0x2bf9   :  { %v2013_v57 = vpop.permute.xlu1 %2012 }
0x2bfa   :  { %v2015_v58 = vmul.f32 %v2713_v45, %v2013_v57 }
0x2bfc   :  { %v2028_v59 = vrot.slane %v2015_v58, 6 }
0x2bfe   :  { %2029 = vrot.lane.b32.xlu0 %v2028_v59, %s2844_s1 }
0x2c70   :  { %v2030_v39 = vpop.permute.xlu0 %2029 }
0x2c71   :  { %2460 = vmatmul.mubr.msk.f32.vlgmr.msra.gmra.mrb[18].mxu0 %vm203_vm3, %v2030_v39 }
0x2d44   :  { %v2099_v61 = vpop.f32.mrb[18].mxu0 }
0x2d45   :  { %v2100_v62 = vadd.f32 %v2160_v60, %v2099_v61  ;;  %v2461_v18 = vpop.f32.mrb[19].mxu0 }
0x2d47   :  { %2104 = vst.msk [vmem:[#allocation11] sm:$0x3] %vm2103_vm7, %v2100_v62 }
0x2d48   :  { %2815 = shalt.err (!%p2812_p8)
}
0x2d49   :  { %s2816_s1 = scalar_lea.hbm %s3288_s11, 32 }
0x2d4a   :  { %p2817_p9 = scmp.ne.s32.totalorder %s3288_s11, %s2816_s1  ;;  %p2820_p10 = scmp.lt.u32.totalorder %s2816_s1, %s3288_s11 }
0x2d4c   :  { %p2822_p11 = pnand %p2820_p10, %p2817_p9 }
0x2d4e   :  { %2825 = shalt.err (!%p2822_p11)
}
0x2d4f   :  { %2114 = dma.vmem_to_hbm [thread:$0]  %s2112_s5, 32, %s3288_s11, [#allocation5]  }
0x2d50   :  { %2832 = dma.done.wait [#allocation5], 32  }
0x2d51   :  { %2833 = vsyncadd [#allocation5], 4294967264 }
0x2d52   :  { %2118 = vsyncpa [#allocation4], 1 }
0x2d53   :  { %2119 = vsyncpa [#allocation7], 1 }
0x2d54   :  { %2120 = vsyncpa [#allocation10], 1 }
0x2d55   :  { %2121 = vsyncpa [#allocation5], 1 }

</bundles_post_ra>
